<compile_context>
chip_gen: v6e
topology: v6e:2x2x1
jax: 0.10.0
libtpu: 0.0.40
codegen_flags: <defaults>
</compile_context>

<pallas_src>
import math
import jax
import jax.numpy as jnp
from jax.experimental import pallas as pl
from jax.experimental.pallas import tpu as pltpu

# ---- synthetic config (matches module __init__ semantics) ----
B, S, HID = 2, 8, 32            # batch, seq_len, hidden_size
NH = 2                          # num_heads
KS, VS, R = 8, 8, 8             # key_size, value_size, route_size
TOTAL = KS + KS + VS + R        # per-head width of the W projection
SCALE = 1.0 / math.sqrt(KS + R)
# TODO(synk): the original Old module's route-value branch is broken in the source
# (`D.sequeeze(1)` typo and a head-dim mismatch in the einsum); we implement the
# evident per-head intent: context += einsum('bhij,bijhv->bhiv', probs, Wroute(D^T)).
USE_ROUTE_VALUES = True


def gsa_kernel(h_ref, mask_ref, d_ref, w_ref, wr_ref, out_ref):
    # Single kernel invocation: both batches and all heads handled here.
    # Fused projection over B*S rows and every head at once: [B*S, NH*TOTAL].
    h2 = jnp.dot(h_ref[...], w_ref[...], preferred_element_type=jnp.float32)
    wr = wr_ref[...]                         # [R, NH*VS]

    for b in range(B):                       # B = 2 -> fully unrolled
        hb = h2[b * S:(b + 1) * S, :]        # [S, NH*TOTAL]  (static slice)
        Db = d_ref[b]                        # [S, R, S]      native route layout
        maskb = mask_ref[b]                  # [1, S]         additive mask row

        ctx_heads = []
        for h in range(NH):                  # NH = 2 -> fully unrolled
            base = h * TOTAL
            # fold SCALE into q and r (review item: O(S*K) instead of O(S^2))
            q = hb[:, base:base + KS] * SCALE                    # [S, KS]
            k = hb[:, base + KS:base + 2 * KS]                   # [S, KS]
            v = hb[:, base + 2 * KS:base + 2 * KS + VS]          # [S, VS]
            r = hb[:, base + 2 * KS + VS:base + TOTAL] * SCALE   # [S, R]

            # RD[i, j] = sum_r r[i, r] * D[i, r, j]  (== matmul(R.unsqueeze(-2), D))
            # TODO(synk): at realistic S, route this through the MXU (row-batched
            # dot_general) instead of VPU broadcast + XLU reduce.
            rd = jnp.sum(r[:, :, None] * Db, axis=1)             # [S, S]
            qk = jnp.dot(q, k.T, preferred_element_type=jnp.float32)
            scores = qk + rd + maskb                             # SCALE already folded

            # softmax (attention_dropout = 0 -> identity)
            m = jnp.max(scores, axis=-1, keepdims=True)
            e = jnp.exp(scores - m)
            denom = jnp.sum(e, axis=-1, keepdims=True)
            probs = e * pl.reciprocal(denom, approx=True)

            if USE_ROUTE_VALUES:
                # pd[i, r] = sum_j probs[i, j] * D[i, r, j]; then the refolded
                # route-value term is pd @ Wroute_h.  Fuse it with probs @ v into
                # a single [S, S+R] @ [S+R, VS] MXU push (review item).
                pd = jnp.sum(probs[:, None, :] * Db, axis=-1)    # [S, R]
                lhs = jnp.concatenate([probs, pd], axis=-1)      # [S, S+R]
                rhs = jnp.concatenate([v, wr[:, h * VS:(h + 1) * VS]], axis=0)
                ctx = jnp.dot(lhs, rhs, preferred_element_type=jnp.float32)
            else:
                ctx = jnp.dot(probs, v, preferred_element_type=jnp.float32)

            ctx_heads.append(ctx)                                # [S, VS]

        # direct final-layout store == context.transpose(1, 2).view(B, S, NH*VS)
        out_ref[b] = jnp.concatenate(ctx_heads, axis=-1)


def graph_self_attention(Hx, D, mask, W_mat, Wr_mat):
    # wrapper-side layout plumbing only (contiguous reshapes, no compute)
    H_flat = Hx.reshape(B * S, HID)          # fused per-call projection rows
    D_sq = D.reshape(B, S, R, S)             # drop the broadcast head dim
    mask2 = mask.reshape(B, 1, S)            # [B, 1, S] additive mask

    return pl.pallas_call(
        gsa_kernel,
        out_shape=jax.ShapeDtypeStruct((B, S, NH * VS), jnp.float32),
        # No grid: one invocation, whole (tiny) arrays resident in VMEM.
        in_specs=[
            pl.BlockSpec(memory_space=pltpu.MemorySpace.VMEM),   # H (flattened)
            pl.BlockSpec(memory_space=pltpu.MemorySpace.VMEM),   # mask
            pl.BlockSpec(memory_space=pltpu.MemorySpace.VMEM),   # D (route)
            pl.BlockSpec(memory_space=pltpu.MemorySpace.VMEM),   # W
            pl.BlockSpec(memory_space=pltpu.MemorySpace.VMEM),   # Wroute
        ],
        out_specs=pl.BlockSpec(memory_space=pltpu.MemorySpace.VMEM),
    )(H_flat, mask2, D_sq, W_mat, Wr_mat)


def reference(Hx, D, mask, W_mat, Wr_mat):
    # pure-JAX reference matching GraphSelfAttentionOld.forward
    h2 = (Hx @ W_mat).reshape(B, S, NH, TOTAL).transpose(0, 2, 1, 3)   # [B,NH,S,TOTAL]
    q = h2[..., 0:KS]
    k = h2[..., KS:2 * KS]
    v = h2[..., 2 * KS:2 * KS + VS]
    r = h2[..., 2 * KS + VS:]
    Dsq = D[:, 0]                                                      # [B,S,R,S]
    rd = jnp.einsum('bhir,birj->bhij', r, Dsq)
    scores = SCALE * (jnp.einsum('bhid,bhjd->bhij', q, k) + rd) + mask
    probs = jax.nn.softmax(scores, axis=-1)
    ctx = jnp.einsum('bhij,bhjv->bhiv', probs, v)
    if USE_ROUTE_VALUES:
        Dt = jnp.transpose(Dsq, (0, 1, 3, 2))                          # [B,S,S,R]
        wd = (Dt.reshape(B * S * S, R) @ Wr_mat).reshape(B, S, S, NH, VS)
        ctx = ctx + jnp.einsum('bhij,bijhv->bhiv', probs, wd)
    return ctx.transpose(0, 2, 1, 3).reshape(B, S, NH * VS)


if __name__ == "__main__":
    key = jax.random.PRNGKey(0)
    k_h, k_d, k_w, k_wr = jax.random.split(key, 4)

    Hx = jax.random.normal(k_h, (B, S, HID), dtype=jnp.float32)
    D = jax.random.normal(k_d, (B, 1, S, R, S), dtype=jnp.float32)

    # additive mask: everything allowed except the last key position in batch 1
    mask = jnp.zeros((B, 1, 1, S), dtype=jnp.float32)
    mask = mask.at[1, :, :, S - 1].set(-10000.0)

    # Linear(bias=False)-style weights, stored as [in, out]
    W_mat = jax.random.normal(k_w, (HID, NH * TOTAL), dtype=jnp.float32) / math.sqrt(HID)
    Wr_mat = jax.random.normal(k_wr, (R, NH * VS), dtype=jnp.float32) / math.sqrt(R)

    out = jax.block_until_ready(graph_self_attention(Hx, D, mask, W_mat, Wr_mat))
    ref = jax.block_until_ready(reference(Hx, D, mask, W_mat, Wr_mat))

    assert out.shape == (B, S, NH * VS)
    # tolerance loosened slightly for the EUP approximate reciprocal in the softmax
    assert jnp.allclose(out, ref, rtol=2e-3, atol=2e-3), (
        f"max abs err = {jnp.max(jnp.abs(out - ref))}")
    print("KERNEL_OK")
</pallas_src>

<mosaic_0001>
module attributes {stable_mosaic.version = 11 : i64} {
  func.func @gsa_kernel(%arg0: memref<16x32xf32, #tpu.memory_space<vmem>>, %arg1: memref<2x1x8xf32, #tpu.memory_space<vmem>>, %arg2: memref<2x8x8x8xf32, #tpu.memory_space<vmem>>, %arg3: memref<32x64xf32, #tpu.memory_space<vmem>>, %arg4: memref<8x16xf32, #tpu.memory_space<vmem>>, %arg5: memref<2x8x16xf32, #tpu.memory_space<vmem>>) attributes {dimension_semantics = [], scalar_prefetch = 0 : i64, scratch_operands = 0 : i64, tpu.core_type = #tpu.core_type<tc>} {
    %c0 = arith.constant 0 : index
    %c0_0 = arith.constant 0 : index
    %0 = vector.load %arg0[%c0, %c0_0] : memref<16x32xf32, #tpu.memory_space<vmem>>, vector<16x32xf32>
    %c0_1 = arith.constant 0 : index
    %c0_2 = arith.constant 0 : index
    %1 = vector.load %arg3[%c0_1, %c0_2] : memref<32x64xf32, #tpu.memory_space<vmem>>, vector<32x64xf32>
    %cst = arith.constant dense<0.000000e+00> : vector<16x64xf32>
    %2 = tpu.matmul %0, %1, %cst {dimension_numbers = #tpu.dot_dimension_numbers<[1], [0], [0], [1], [0, 0, 1, 1], [], []>} : vector<16x32xf32>, vector<32x64xf32>, vector<16x64xf32> -> vector<16x64xf32>
    %c0_3 = arith.constant 0 : index
    %c0_4 = arith.constant 0 : index
    %3 = vector.load %arg4[%c0_3, %c0_4] : memref<8x16xf32, #tpu.memory_space<vmem>>, vector<8x16xf32>
    %4 = vector.extract_strided_slice %2 {offsets = [0, 0], sizes = [8, 64], strides = [1, 1]} : vector<16x64xf32> to vector<8x64xf32>
    %c0_5 = arith.constant 0 : index
    %c0_6 = arith.constant 0 : index
    %c0_7 = arith.constant 0 : index
    %c0_8 = arith.constant 0 : index
    %5 = vector.load %arg2[%c0_5, %c0_6, %c0_7, %c0_8] : memref<2x8x8x8xf32, #tpu.memory_space<vmem>>, vector<1x8x8x8xf32>
    %6 = vector.shape_cast %5 : vector<1x8x8x8xf32> to vector<8x8x8xf32>
    %c0_9 = arith.constant 0 : index
    %c0_10 = arith.constant 0 : index
    %c0_11 = arith.constant 0 : index
    %7 = vector.load %arg1[%c0_9, %c0_10, %c0_11] : memref<2x1x8xf32, #tpu.memory_space<vmem>>, vector<1x1x8xf32>
    %8 = vector.shape_cast %7 : vector<1x1x8xf32> to vector<1x8xf32>
    %9 = vector.extract_strided_slice %4 {offsets = [0, 0], sizes = [8, 8], strides = [1, 1]} : vector<8x64xf32> to vector<8x8xf32>
    %cst_12 = arith.constant 2.500000e-01 : f32
    %10 = vector.broadcast %cst_12 : f32 to vector<8x8xf32>
    %11 = arith.mulf %9, %10 : vector<8x8xf32>
    %12 = vector.extract_strided_slice %4 {offsets = [0, 8], sizes = [8, 8], strides = [1, 1]} : vector<8x64xf32> to vector<8x8xf32>
    %13 = vector.extract_strided_slice %4 {offsets = [0, 16], sizes = [8, 8], strides = [1, 1]} : vector<8x64xf32> to vector<8x8xf32>
    %14 = vector.extract_strided_slice %4 {offsets = [0, 24], sizes = [8, 8], strides = [1, 1]} : vector<8x64xf32> to vector<8x8xf32>
    %cst_13 = arith.constant 2.500000e-01 : f32
    %15 = vector.broadcast %cst_13 : f32 to vector<8x8xf32>
    %16 = arith.mulf %14, %15 : vector<8x8xf32>
    %17 = vector.shape_cast %16 : vector<8x8xf32> to vector<8x8x1xf32>
    %18 = vector.broadcast %17 : vector<8x8x1xf32> to vector<8x8x8xf32>
    %19 = arith.mulf %18, %6 : vector<8x8x8xf32>
    %cst_14 = arith.constant dense<0.000000e+00> : vector<8x8xf32>
    %20 = vector.multi_reduction <add>, %19, %cst_14 [1] : vector<8x8x8xf32> to vector<8x8xf32>
    %21 = tpu.transpose %12, [1, 0] : vector<8x8xf32> -> vector<8x8xf32>
    %cst_15 = arith.constant dense<0.000000e+00> : vector<8x8xf32>
    %22 = tpu.matmul %11, %21, %cst_15 {dimension_numbers = #tpu.dot_dimension_numbers<[1], [0], [0], [1], [0, 0, 1, 1], [], []>} : vector<8x8xf32>, vector<8x8xf32>, vector<8x8xf32> -> vector<8x8xf32>
    %23 = arith.addf %22, %20 : vector<8x8xf32>
    %24 = vector.broadcast %8 : vector<1x8xf32> to vector<8x8xf32>
    %25 = arith.addf %23, %24 : vector<8x8xf32>
    %cst_16 = arith.constant dense<0xFF800000> : vector<8xf32>
    %26 = vector.multi_reduction <maximumf>, %25, %cst_16 [1] : vector<8x8xf32> to vector<8xf32>
    %27 = vector.shape_cast %26 : vector<8xf32> to vector<8x1xf32>
    %28 = vector.broadcast %27 : vector<8x1xf32> to vector<8x8xf32>
    %29 = arith.subf %25, %28 : vector<8x8xf32>
    %30 = math.exp %29 : vector<8x8xf32>
    %cst_17 = arith.constant dense<0.000000e+00> : vector<8xf32>
    %31 = vector.multi_reduction <add>, %30, %cst_17 [1] : vector<8x8xf32> to vector<8xf32>
    %32 = vector.shape_cast %31 : vector<8xf32> to vector<8x1xf32>
    %33 = tpu.reciprocal %32 {approx = true} : vector<8x1xf32> -> vector<8x1xf32>
    %34 = vector.broadcast %33 : vector<8x1xf32> to vector<8x8xf32>
    %35 = arith.mulf %30, %34 : vector<8x8xf32>
    %36 = vector.shape_cast %35 : vector<8x8xf32> to vector<8x1x8xf32>
    %37 = vector.broadcast %36 : vector<8x1x8xf32> to vector<8x8x8xf32>
    %38 = arith.mulf %37, %6 : vector<8x8x8xf32>
    %cst_18 = arith.constant dense<0.000000e+00> : vector<8x8xf32>
    %39 = vector.multi_reduction <add>, %38, %cst_18 [2] : vector<8x8x8xf32> to vector<8x8xf32>
    %40 = tpu.concatenate %35, %39 in 1 : vector<8x8xf32>, vector<8x8xf32> -> vector<8x16xf32>
    %41 = vector.extract_strided_slice %3 {offsets = [0, 0], sizes = [8, 8], strides = [1, 1]} : vector<8x16xf32> to vector<8x8xf32>
    %42 = tpu.concatenate %13, %41 in 0 : vector<8x8xf32>, vector<8x8xf32> -> vector<16x8xf32>
    %cst_19 = arith.constant dense<0.000000e+00> : vector<8x8xf32>
    %43 = tpu.matmul %40, %42, %cst_19 {dimension_numbers = #tpu.dot_dimension_numbers<[1], [0], [0], [1], [0, 0, 1, 1], [], []>} : vector<8x16xf32>, vector<16x8xf32>, vector<8x8xf32> -> vector<8x8xf32>
    %44 = vector.extract_strided_slice %4 {offsets = [0, 32], sizes = [8, 8], strides = [1, 1]} : vector<8x64xf32> to vector<8x8xf32>
    %cst_20 = arith.constant 2.500000e-01 : f32
    %45 = vector.broadcast %cst_20 : f32 to vector<8x8xf32>
    %46 = arith.mulf %44, %45 : vector<8x8xf32>
    %47 = vector.extract_strided_slice %4 {offsets = [0, 40], sizes = [8, 8], strides = [1, 1]} : vector<8x64xf32> to vector<8x8xf32>
    %48 = vector.extract_strided_slice %4 {offsets = [0, 48], sizes = [8, 8], strides = [1, 1]} : vector<8x64xf32> to vector<8x8xf32>
    %49 = vector.extract_strided_slice %4 {offsets = [0, 56], sizes = [8, 8], strides = [1, 1]} : vector<8x64xf32> to vector<8x8xf32>
    %cst_21 = arith.constant 2.500000e-01 : f32
    %50 = vector.broadcast %cst_21 : f32 to vector<8x8xf32>
    %51 = arith.mulf %49, %50 : vector<8x8xf32>
    %52 = vector.shape_cast %51 : vector<8x8xf32> to vector<8x8x1xf32>
    %53 = vector.broadcast %52 : vector<8x8x1xf32> to vector<8x8x8xf32>
    %54 = arith.mulf %53, %6 : vector<8x8x8xf32>
    %cst_22 = arith.constant dense<0.000000e+00> : vector<8x8xf32>
    %55 = vector.multi_reduction <add>, %54, %cst_22 [1] : vector<8x8x8xf32> to vector<8x8xf32>
    %56 = tpu.transpose %47, [1, 0] : vector<8x8xf32> -> vector<8x8xf32>
    %cst_23 = arith.constant dense<0.000000e+00> : vector<8x8xf32>
    %57 = tpu.matmul %46, %56, %cst_23 {dimension_numbers = #tpu.dot_dimension_numbers<[1], [0], [0], [1], [0, 0, 1, 1], [], []>} : vector<8x8xf32>, vector<8x8xf32>, vector<8x8xf32> -> vector<8x8xf32>
    %58 = arith.addf %57, %55 : vector<8x8xf32>
    %59 = vector.broadcast %8 : vector<1x8xf32> to vector<8x8xf32>
    %60 = arith.addf %58, %59 : vector<8x8xf32>
    %cst_24 = arith.constant dense<0xFF800000> : vector<8xf32>
    %61 = vector.multi_reduction <maximumf>, %60, %cst_24 [1] : vector<8x8xf32> to vector<8xf32>
    %62 = vector.shape_cast %61 : vector<8xf32> to vector<8x1xf32>
    %63 = vector.broadcast %62 : vector<8x1xf32> to vector<8x8xf32>
    %64 = arith.subf %60, %63 : vector<8x8xf32>
    %65 = math.exp %64 : vector<8x8xf32>
    %cst_25 = arith.constant dense<0.000000e+00> : vector<8xf32>
    %66 = vector.multi_reduction <add>, %65, %cst_25 [1] : vector<8x8xf32> to vector<8xf32>
    %67 = vector.shape_cast %66 : vector<8xf32> to vector<8x1xf32>
    %68 = tpu.reciprocal %67 {approx = true} : vector<8x1xf32> -> vector<8x1xf32>
    %69 = vector.broadcast %68 : vector<8x1xf32> to vector<8x8xf32>
    %70 = arith.mulf %65, %69 : vector<8x8xf32>
    %71 = vector.shape_cast %70 : vector<8x8xf32> to vector<8x1x8xf32>
    %72 = vector.broadcast %71 : vector<8x1x8xf32> to vector<8x8x8xf32>
    %73 = arith.mulf %72, %6 : vector<8x8x8xf32>
    %cst_26 = arith.constant dense<0.000000e+00> : vector<8x8xf32>
    %74 = vector.multi_reduction <add>, %73, %cst_26 [2] : vector<8x8x8xf32> to vector<8x8xf32>
    %75 = tpu.concatenate %70, %74 in 1 : vector<8x8xf32>, vector<8x8xf32> -> vector<8x16xf32>
    %76 = vector.extract_strided_slice %3 {offsets = [0, 8], sizes = [8, 8], strides = [1, 1]} : vector<8x16xf32> to vector<8x8xf32>
    %77 = tpu.concatenate %48, %76 in 0 : vector<8x8xf32>, vector<8x8xf32> -> vector<16x8xf32>
    %cst_27 = arith.constant dense<0.000000e+00> : vector<8x8xf32>
    %78 = tpu.matmul %75, %77, %cst_27 {dimension_numbers = #tpu.dot_dimension_numbers<[1], [0], [0], [1], [0, 0, 1, 1], [], []>} : vector<8x16xf32>, vector<16x8xf32>, vector<8x8xf32> -> vector<8x8xf32>
    %79 = tpu.concatenate %43, %78 in 1 : vector<8x8xf32>, vector<8x8xf32> -> vector<8x16xf32>
    %c0_28 = arith.constant 0 : index
    %c0_29 = arith.constant 0 : index
    %c0_30 = arith.constant 0 : index
    %80 = vector.load %arg5[%c0_28, %c0_29, %c0_30] : memref<2x8x16xf32, #tpu.memory_space<vmem>>, vector<1x8x16xf32>
    %81 = vector.shape_cast %80 : vector<1x8x16xf32> to vector<8x16xf32>
    %82 = vector.shape_cast %79 : vector<8x16xf32> to vector<1x8x16xf32>
    tpu.vector_store %arg5[%c0_28, %c0_29, %c0_30], %82 {strides = array<i32>} : memref<2x8x16xf32, #tpu.memory_space<vmem>>, vector<1x8x16xf32>,
    %83 = vector.extract_strided_slice %2 {offsets = [8, 0], sizes = [8, 64], strides = [1, 1]} : vector<16x64xf32> to vector<8x64xf32>
    %c1 = arith.constant 1 : index
    %c0_31 = arith.constant 0 : index
    %c0_32 = arith.constant 0 : index
    %c0_33 = arith.constant 0 : index
    %84 = vector.load %arg2[%c1, %c0_31, %c0_32, %c0_33] : memref<2x8x8x8xf32, #tpu.memory_space<vmem>>, vector<1x8x8x8xf32>
    %85 = vector.shape_cast %84 : vector<1x8x8x8xf32> to vector<8x8x8xf32>
    %c1_34 = arith.constant 1 : index
    %c0_35 = arith.constant 0 : index
    %c0_36 = arith.constant 0 : index
    %86 = vector.load %arg1[%c1_34, %c0_35, %c0_36] : memref<2x1x8xf32, #tpu.memory_space<vmem>>, vector<1x1x8xf32>
    %87 = vector.shape_cast %86 : vector<1x1x8xf32> to vector<1x8xf32>
    %88 = vector.extract_strided_slice %83 {offsets = [0, 0], sizes = [8, 8], strides = [1, 1]} : vector<8x64xf32> to vector<8x8xf32>
    %cst_37 = arith.constant 2.500000e-01 : f32
    %89 = vector.broadcast %cst_37 : f32 to vector<8x8xf32>
    %90 = arith.mulf %88, %89 : vector<8x8xf32>
    %91 = vector.extract_strided_slice %83 {offsets = [0, 8], sizes = [8, 8], strides = [1, 1]} : vector<8x64xf32> to vector<8x8xf32>
    %92 = vector.extract_strided_slice %83 {offsets = [0, 16], sizes = [8, 8], strides = [1, 1]} : vector<8x64xf32> to vector<8x8xf32>
    %93 = vector.extract_strided_slice %83 {offsets = [0, 24], sizes = [8, 8], strides = [1, 1]} : vector<8x64xf32> to vector<8x8xf32>
    %cst_38 = arith.constant 2.500000e-01 : f32
    %94 = vector.broadcast %cst_38 : f32 to vector<8x8xf32>
    %95 = arith.mulf %93, %94 : vector<8x8xf32>
    %96 = vector.shape_cast %95 : vector<8x8xf32> to vector<8x8x1xf32>
    %97 = vector.broadcast %96 : vector<8x8x1xf32> to vector<8x8x8xf32>
    %98 = arith.mulf %97, %85 : vector<8x8x8xf32>
    %cst_39 = arith.constant dense<0.000000e+00> : vector<8x8xf32>
    %99 = vector.multi_reduction <add>, %98, %cst_39 [1] : vector<8x8x8xf32> to vector<8x8xf32>
    %100 = tpu.transpose %91, [1, 0] : vector<8x8xf32> -> vector<8x8xf32>
    %cst_40 = arith.constant dense<0.000000e+00> : vector<8x8xf32>
    %101 = tpu.matmul %90, %100, %cst_40 {dimension_numbers = #tpu.dot_dimension_numbers<[1], [0], [0], [1], [0, 0, 1, 1], [], []>} : vector<8x8xf32>, vector<8x8xf32>, vector<8x8xf32> -> vector<8x8xf32>
    %102 = arith.addf %101, %99 : vector<8x8xf32>
    %103 = vector.broadcast %87 : vector<1x8xf32> to vector<8x8xf32>
    %104 = arith.addf %102, %103 : vector<8x8xf32>
    %cst_41 = arith.constant dense<0xFF800000> : vector<8xf32>
    %105 = vector.multi_reduction <maximumf>, %104, %cst_41 [1] : vector<8x8xf32> to vector<8xf32>
    %106 = vector.shape_cast %105 : vector<8xf32> to vector<8x1xf32>
    %107 = vector.broadcast %106 : vector<8x1xf32> to vector<8x8xf32>
    %108 = arith.subf %104, %107 : vector<8x8xf32>
    %109 = math.exp %108 : vector<8x8xf32>
    %cst_42 = arith.constant dense<0.000000e+00> : vector<8xf32>
    %110 = vector.multi_reduction <add>, %109, %cst_42 [1] : vector<8x8xf32> to vector<8xf32>
    %111 = vector.shape_cast %110 : vector<8xf32> to vector<8x1xf32>
    %112 = tpu.reciprocal %111 {approx = true} : vector<8x1xf32> -> vector<8x1xf32>
    %113 = vector.broadcast %112 : vector<8x1xf32> to vector<8x8xf32>
    %114 = arith.mulf %109, %113 : vector<8x8xf32>
    %115 = vector.shape_cast %114 : vector<8x8xf32> to vector<8x1x8xf32>
    %116 = vector.broadcast %115 : vector<8x1x8xf32> to vector<8x8x8xf32>
    %117 = arith.mulf %116, %85 : vector<8x8x8xf32>
    %cst_43 = arith.constant dense<0.000000e+00> : vector<8x8xf32>
    %118 = vector.multi_reduction <add>, %117, %cst_43 [2] : vector<8x8x8xf32> to vector<8x8xf32>
    %119 = tpu.concatenate %114, %118 in 1 : vector<8x8xf32>, vector<8x8xf32> -> vector<8x16xf32>
    %120 = vector.extract_strided_slice %3 {offsets = [0, 0], sizes = [8, 8], strides = [1, 1]} : vector<8x16xf32> to vector<8x8xf32>
    %121 = tpu.concatenate %92, %120 in 0 : vector<8x8xf32>, vector<8x8xf32> -> vector<16x8xf32>
    %cst_44 = arith.constant dense<0.000000e+00> : vector<8x8xf32>
    %122 = tpu.matmul %119, %121, %cst_44 {dimension_numbers = #tpu.dot_dimension_numbers<[1], [0], [0], [1], [0, 0, 1, 1], [], []>} : vector<8x16xf32>, vector<16x8xf32>, vector<8x8xf32> -> vector<8x8xf32>
    %123 = vector.extract_strided_slice %83 {offsets = [0, 32], sizes = [8, 8], strides = [1, 1]} : vector<8x64xf32> to vector<8x8xf32>
    %cst_45 = arith.constant 2.500000e-01 : f32
    %124 = vector.broadcast %cst_45 : f32 to vector<8x8xf32>
    %125 = arith.mulf %123, %124 : vector<8x8xf32>
    %126 = vector.extract_strided_slice %83 {offsets = [0, 40], sizes = [8, 8], strides = [1, 1]} : vector<8x64xf32> to vector<8x8xf32>
    %127 = vector.extract_strided_slice %83 {offsets = [0, 48], sizes = [8, 8], strides = [1, 1]} : vector<8x64xf32> to vector<8x8xf32>
    %128 = vector.extract_strided_slice %83 {offsets = [0, 56], sizes = [8, 8], strides = [1, 1]} : vector<8x64xf32> to vector<8x8xf32>
    %cst_46 = arith.constant 2.500000e-01 : f32
    %129 = vector.broadcast %cst_46 : f32 to vector<8x8xf32>
    %130 = arith.mulf %128, %129 : vector<8x8xf32>
    %131 = vector.shape_cast %130 : vector<8x8xf32> to vector<8x8x1xf32>
    %132 = vector.broadcast %131 : vector<8x8x1xf32> to vector<8x8x8xf32>
    %133 = arith.mulf %132, %85 : vector<8x8x8xf32>
    %cst_47 = arith.constant dense<0.000000e+00> : vector<8x8xf32>
    %134 = vector.multi_reduction <add>, %133, %cst_47 [1] : vector<8x8x8xf32> to vector<8x8xf32>
    %135 = tpu.transpose %126, [1, 0] : vector<8x8xf32> -> vector<8x8xf32>
    %cst_48 = arith.constant dense<0.000000e+00> : vector<8x8xf32>
    %136 = tpu.matmul %125, %135, %cst_48 {dimension_numbers = #tpu.dot_dimension_numbers<[1], [0], [0], [1], [0, 0, 1, 1], [], []>} : vector<8x8xf32>, vector<8x8xf32>, vector<8x8xf32> -> vector<8x8xf32>
    %137 = arith.addf %136, %134 : vector<8x8xf32>
    %138 = vector.broadcast %87 : vector<1x8xf32> to vector<8x8xf32>
    %139 = arith.addf %137, %138 : vector<8x8xf32>
    %cst_49 = arith.constant dense<0xFF800000> : vector<8xf32>
    %140 = vector.multi_reduction <maximumf>, %139, %cst_49 [1] : vector<8x8xf32> to vector<8xf32>
    %141 = vector.shape_cast %140 : vector<8xf32> to vector<8x1xf32>
    %142 = vector.broadcast %141 : vector<8x1xf32> to vector<8x8xf32>
    %143 = arith.subf %139, %142 : vector<8x8xf32>
    %144 = math.exp %143 : vector<8x8xf32>
    %cst_50 = arith.constant dense<0.000000e+00> : vector<8xf32>
    %145 = vector.multi_reduction <add>, %144, %cst_50 [1] : vector<8x8xf32> to vector<8xf32>
    %146 = vector.shape_cast %145 : vector<8xf32> to vector<8x1xf32>
    %147 = tpu.reciprocal %146 {approx = true} : vector<8x1xf32> -> vector<8x1xf32>
    %148 = vector.broadcast %147 : vector<8x1xf32> to vector<8x8xf32>
    %149 = arith.mulf %144, %148 : vector<8x8xf32>
    %150 = vector.shape_cast %149 : vector<8x8xf32> to vector<8x1x8xf32>
    %151 = vector.broadcast %150 : vector<8x1x8xf32> to vector<8x8x8xf32>
    %152 = arith.mulf %151, %85 : vector<8x8x8xf32>
    %cst_51 = arith.constant dense<0.000000e+00> : vector<8x8xf32>
    %153 = vector.multi_reduction <add>, %152, %cst_51 [2] : vector<8x8x8xf32> to vector<8x8xf32>
    %154 = tpu.concatenate %149, %153 in 1 : vector<8x8xf32>, vector<8x8xf32> -> vector<8x16xf32>
    %155 = vector.extract_strided_slice %3 {offsets = [0, 8], sizes = [8, 8], strides = [1, 1]} : vector<8x16xf32> to vector<8x8xf32>
    %156 = tpu.concatenate %127, %155 in 0 : vector<8x8xf32>, vector<8x8xf32> -> vector<16x8xf32>
    %cst_52 = arith.constant dense<0.000000e+00> : vector<8x8xf32>
    %157 = tpu.matmul %154, %156, %cst_52 {dimension_numbers = #tpu.dot_dimension_numbers<[1], [0], [0], [1], [0, 0, 1, 1], [], []>} : vector<8x16xf32>, vector<16x8xf32>, vector<8x8xf32> -> vector<8x8xf32>
    %158 = tpu.concatenate %122, %157 in 1 : vector<8x8xf32>, vector<8x8xf32> -> vector<8x16xf32>
    %c1_53 = arith.constant 1 : index
    %c0_54 = arith.constant 0 : index
    %c0_55 = arith.constant 0 : index
    %159 = vector.load %arg5[%c1_53, %c0_54, %c0_55] : memref<2x8x16xf32, #tpu.memory_space<vmem>>, vector<1x8x16xf32>
    %160 = vector.shape_cast %159 : vector<1x8x16xf32> to vector<8x16xf32>
    %161 = vector.shape_cast %158 : vector<8x16xf32> to vector<1x8x16xf32>
    tpu.vector_store %arg5[%c1_53, %c0_54, %c0_55], %161 {strides = array<i32>} : memref<2x8x16xf32, #tpu.memory_space<vmem>>, vector<1x8x16xf32>,
    return
  }
}

</mosaic_0001>

<bundles_post_ra>
// kernel: tpu_custom_call.1
= control target key start
LH: loop header
LB: loop body
LE: loop exit
PB: predicated region body
PF: predicated region fallthrough
CT: control target
= control target key end

     0   :  { %10 = vsyncpa [#allocation3], 0  ;;  %s3005_s0 = inlined_call_operand.hbm [shape: f32[16,32], index: 0, kind: input, shape index: {}]   ;;  %s3006_s1 = inlined_call_operand.hbm [shape: f32[2,1,8], index: 1, kind: input, shape index: {}]   ;;  %s3007_s2 = inlined_call_operand.hbm [shape: f32[2,8,8,8], index: 2, kind: input, shape index: {}]   ;;  %s3008_s3 = inlined_call_operand.hbm [shape: f32[32,64], index: 3, kind: input, shape index: {}]   ;;  %s3009_s4 = inlined_call_operand.hbm [shape: f32[8,16], index: 4, kind: input, shape index: {}]   ;;  %s3010_s5 = inlined_call_operand.hbm [shape: f32[2,8,16], index: 5, kind: output, shape index: {}]  }
   0x1   :  { %11 = vsyncpa [#allocation6], 0 }
   0x2   :  { %12 = vsyncpa [#allocation9], 0 }
   0x3   :  { %13 = vsyncpa [#allocation4], 0  ;;  %s2397_s18 = smov [#allocation5]  }
   0x4   :  { %s31_s19 = sshll.u32 %s2397_s18, 4  ;;  %s32_s19 = int_to_ptr.vmem [resolvable:$true] %s31_s19 }
   0x5   :  { %s2277_s20 = scalar_lea.vmem %s32_s19, 32  ;;  %p2282_p1 = scmp.lt.s32.totalorder %s32_s19, %s32_s19 }
   0x6   :  { %p2278_p0 = scmp.ne.s32.totalorder %s32_s19, %s2277_s20  ;;  %p2283_p2 = scmp.lt.s32.totalorder %s2277_s20, %s2277_s20 }
   0x8   :  { %p2284_p3 = por %p2283_p2, %p2282_p1 }
   0xa   :  { %p2285_p4 = pnand %p2284_p3, %p2278_p0 }
   0xc   :  { %2288 = shalt.err (!%p2285_p4)
}
   0xd   :  { %s2398_s21 = smov 16   ;;  %s2399_s22 = smov 1  }
   0xe   :  { %37 = dma.hbm_to_vmem [thread:$0]  %s3006_s1, 32, %s32_s19, [#allocation6], %s2398_s21, %s2398_s21, %s2399_s22  }
   0xf   :  { %s2400_s25 = smov [#allocation8]   ;;  %s2401_s27 = smov [#allocation2]  }
  0x10   :  { %s55_s26 = sshll.u32 %s2400_s25, 4  ;;  %s19_s28 = sshll.u32 %s2401_s27, 4  ;;  %s56_s26 = int_to_ptr.vmem [resolvable:$true] %s55_s26  ;;  %s20_s28 = int_to_ptr.vmem [resolvable:$true] %s19_s28 }
  0x11   :  { %s2297_s29 = scalar_lea.vmem %s56_s26, 512  ;;  %p2302_p6 = scmp.lt.s32.totalorder %s56_s26, %s56_s26 }
  0x12   :  { %p2298_p5 = scmp.ne.s32.totalorder %s56_s26, %s2297_s29  ;;  %p2303_p7 = scmp.lt.s32.totalorder %s2297_s29, %s2297_s29 }
  0x14   :  { %p2304_p8 = por %p2303_p7, %p2302_p6 }
  0x16   :  { %p2305_p9 = pnand %p2304_p8, %p2298_p5 }
  0x18   :  { %2308 = shalt.err (!%p2305_p9)
}
  0x19   :  { %s2402_s30 = smov 128   ;;  %s2403_s6 = smov 8  }
  0x1a   :  { %61 = dma.hbm_to_vmem [thread:$0]  %s3008_s3, 512, %s56_s26, [#allocation9], %s2402_s30, %s2402_s30, %s2403_s6  }
  0x1b   :  { %s2317_s1 = scalar_lea.vmem %s20_s28, 256  ;;  %p2322_p11 = scmp.lt.s32.totalorder %s20_s28, %s20_s28 }
  0x1c   :  { %p2318_p10 = scmp.ne.s32.totalorder %s20_s28, %s2317_s1  ;;  %p2323_p12 = scmp.lt.s32.totalorder %s2317_s1, %s2317_s1 }
  0x1e   :  { %p2324_p13 = por %p2323_p12, %p2322_p11 }
  0x20   :  { %p2325_p0 = pnand %p2324_p13, %p2318_p10 }
  0x22   :  { %2328 = shalt.err (!%p2325_p0)
}
  0x23   :  { %25 = dma.hbm_to_vmem [thread:$0]  %s3005_s0, 256, %s20_s28, [#allocation3], %s2402_s30, %s2402_s30, %s2403_s6  }
  0x24   :  { %s2404_s11 = smov [#allocation7]   ;;  %s2405_s13 = smov [#allocation10]  }
  0x25   :  { %s43_s12 = sshll.u32 %s2404_s11, 4  ;;  %s68_s3 = sshll.u32 %s2405_s13, 4  ;;  %s44_s12 = int_to_ptr.vmem [resolvable:$true] %s43_s12  ;;  %s69_s3 = int_to_ptr.vmem [resolvable:$true] %s68_s3 }
  0x26   :  { %s2337_s14 = scalar_lea.vmem %s44_s12, 2048  ;;  %p2342_p2 = scmp.lt.s32.totalorder %s44_s12, %s44_s12 }
  0x27   :  { %p2338_p1 = scmp.ne.s32.totalorder %s44_s12, %s2337_s14  ;;  %p2343_p3 = scmp.lt.s32.totalorder %s2337_s14, %s2337_s14 }
  0x29   :  { %p2344_p4 = por %p2343_p3, %p2342_p2 }
  0x2b   :  { %p2345_p5 = pnand %p2344_p4, %p2338_p1 }
  0x2d   :  { %2348 = shalt.err (!%p2345_p5)
}
  0x2e   :  { %49 = dma.hbm_to_vmem [thread:$0]  %s3007_s2, 2048, %s44_s12, [#allocation6], %s2402_s30, %s2402_s30, %s2403_s6  }
  0x2f   :  { %s2357_s0 = scalar_lea.vmem %s69_s3, 128  ;;  %p2362_p7 = scmp.lt.s32.totalorder %s69_s3, %s69_s3 }
  0x30   :  { %p2358_p6 = scmp.ne.s32.totalorder %s69_s3, %s2357_s0  ;;  %p2363_p8 = scmp.lt.s32.totalorder %s2357_s0, %s2357_s0 }
  0x32   :  { %p2364_p9 = por %p2363_p8, %p2362_p7 }
  0x34   :  { %p2365_p10 = pnand %p2364_p9, %p2358_p6 }
  0x36   :  { %2368 = shalt.err (!%p2365_p10)
}
  0x37   :  { %71 = dma.hbm_to_vmem [thread:$0]  %s3009_s4, 128, %s69_s3, [#allocation9]  }
  0x38   :  { %2389 = dma.done.wait [#allocation3], 256  }
  0x39   :  { %2390 = vsyncadd [#allocation3], 4294967040 }
  0x3a   :  { %2391 = dma.done.wait [#allocation6], 2080  }
  0x3b   :  { %2392 = vsyncadd [#allocation6], 4294965216 }
  0x3c   :  { %2393 = dma.done.wait [#allocation9], 640  }
  0x3d   :  { %2394 = vsyncadd [#allocation9], 4294966656  ;;  %vm93_vm0 = vcmask 261120   ;;  %v92_v0 = vld [vmem:[#allocation8 + $0x18] sm:$0xff]  ;;  %v91_v1 = vld [vmem:[#allocation8 + $0x10] sm:$0xff]  ;;  %v3012_v6 = vmov 0.0   ;;  %v3011_v8 = vlaneseq }
  0x3e   :  { %2167 = vmatprep.subr.mxu0 %v92_v0  ;;  %v87_v2 = vld [vmem:[#allocation2] sm:$0xff]  ;;  %v89_v4 = vld [vmem:[#allocation8] sm:$0xff]  ;;  %v88_v5 = vld [vmem:[#allocation2 + $0x8] sm:$0xff]  ;;  %2178 = vmatprep.subr.mxu1 %v3012_v6  ;;  %vm2407_vm1 = vmmov 0   ;;  %s2408_s2 = smov 120   ;;  %s2409_s4 = smov 96  }
  0x3f   :  { %2168 = vmatpush3.msra.mxu0 %v92_v0  ;;  %v90_v3 = vld [vmem:[#allocation8 + $0x8] sm:$0xff]  ;;  %2175 = vmatprep.mubr.msk.f32.mxu0 %vm93_vm0, %v87_v2  ;;  %v2490_v11 = vshrl.u32 %v3011_v8, 7  ;;  %s2410_s19 = smov 88   ;;  %vm258_vm2 = vcmask 64512   ;;  %v2548_v56 = vld [vmem:[#allocation7 + $0x40] sm:$0xff]  ;;  %v1154_v60 = vld [vmem:[#allocation7 + $0x50] sm:$0xff] }
  0x40   :  { %2169 = vmatprep.subr.mxu0 %v91_v1  ;;  %2180 = vmatprep.mubr.msk.f32.mxu1 %vm2407_vm1, %v3012_v6  ;;  %v1153_v54 = vld [vmem:[#allocation7 + $0x48] sm:$0xff]  ;;  %3026 = vst [vmem:[#allocation17_spill] sm:$0xff] %v2548_v56  ;;  %v2552_v63 = vld [vmem:[#allocation7 + $0x60] sm:$0xff]  ;;  %vm326_vm3 = vcmask 1041409   ;;  %vm328_vm4 = vcmask 1042434   ;;  %vm330_vm5 = vcmask 1043459  }
  0x41   :  { %2170 = vmatpush3.msra.mxu0 %v91_v1  ;;  %v2498_v13 = vsub.s32 0, %v2490_v11  ;;  %v196_v14 = vsub.s32 1, %v2490_v11  ;;  %v220_v16 = vsub.s32 4, %v2490_v11  ;;  %v204_v18 = vsub.s32 2, %v2490_v11  ;;  %s2411_s20 = smov 40   ;;  %s2412_s22 = smov 112  }
  0x42   :  { %2171 = vmatprep.subr.mxu0 %v90_v3  ;;  %v212_v21 = vsub.s32 3, %v2490_v11  ;;  %v236_v22 = vsub.s32 6, %v2490_v11  ;;  %v228_v24 = vsub.s32 5, %v2490_v11  ;;  %v244_v26 = vsub.s32 7, %v2490_v11  ;;  %s2415_s23 = smov [#allocation11]  }
  0x43   :  { %2172 = vmatpush3.msra.mxu0 %v90_v3  ;;  %vm332_vm6 = vcmask 1044484   ;;  %vm334_vm7 = vcmask 1045509   ;;  %vm336_vm8 = vcmask 1046534   ;;  %vm338_vm9 = vcmask 1047559   ;;  %s2111_s24 = sshll.u32 %s2415_s23, 4  ;;  %s2112_s24 = int_to_ptr.vmem [resolvable:$true] %s2111_s24 }
  0x44   :  { %2173 = vmatprep.subr.mxu0 %v89_v4  ;;  %vm617_vm10 = vcmask 130048   ;;  %s2369_s25 = scalar_lea.vmem %s2112_s24, 256  ;;  %p2374_p12 = scmp.lt.s32.totalorder %s2112_s24, %s2112_s24 }
  0x45   :  { %2174 = vmatpush3.msra.mxu0 %v89_v4  ;;  %p2370_p11 = scmp.ne.s32.totalorder %s2112_s24, %s2369_s25  ;;  %p2375_p13 = scmp.lt.s32.totalorder %s2369_s25, %s2369_s25 }
  0x46   :  { %2176 = vmatmul.mubr.msk.f32.vlgmr.msra.gmra.mxu0 %vm93_vm0, %v88_v5  ;;  %2190 = vmatprep.subr.mxu0 %v3012_v6 }
  0x47   :  { %2192 = vmatprep.mubr.msk.f32.mxu0 %vm2407_vm1, %v3012_v6  ;;  %p2376_p0 = por %p2375_p13, %p2374_p12 }
  0x49   :  { %p2377_p1 = pnand %p2376_p0, %p2370_p11 }
 0x106   :  { %v2480_v7 = vpop.f32.mrf.mxu0 }
 0x107   :  { %3025 = vst [vmem:[#allocation16_spill] sm:$0xff] %v2480_v7  ;;  %v2494_v12 = vmul.f32 0.25, %v2480_v7 }
 0x108   :  { %v2482_v9 = vpop.f32.mrf.mxu0 }
 0x109   :  { %v2485_v10 = vmul.f32 0.25, %v2482_v9  ;;  %316 = vrot.lane.b32.xlu0 %v2482_v9, %s2408_s2  ;;  %v1166_v15 = vrot.slane %v2494_v12, %v2498_v13  ;;  %v1174_v17 = vrot.slane %v2494_v12, %v196_v14  ;;  %v1198_v19 = vrot.slane %v2494_v12, %v220_v16 }
 0x10a   :  { %v1182_v20 = vrot.slane %v2494_v12, %v204_v18  ;;  %v1190_v23 = vrot.slane %v2494_v12, %v212_v21  ;;  %v1214_v25 = vrot.slane %v2494_v12, %v236_v22  ;;  %v1206_v27 = vrot.slane %v2494_v12, %v228_v24 }
 0x10b   :  { %787 = vrot.lane.b32.xlu1 %v2485_v10, %s2409_s4  ;;  %v1222_v28 = vrot.slane %v2494_v12, %v244_v26  ;;  %v189_v29 = vrot.slane %v2485_v10, %v2498_v13  ;;  %v205_v30 = vrot.slane %v2485_v10, %v204_v18  ;;  %v197_v31 = vrot.slane %v2485_v10, %v196_v14  ;;  %v2563_v18 = vld [vmem:[#allocation7 + $0x58] sm:$0xff] }
 0x10c   :  { %v221_v32 = vrot.slane %v2485_v10, %v220_v16  ;;  %v213_v33 = vrot.slane %v2485_v10, %v212_v21  ;;  %v229_v34 = vrot.slane %v2485_v10, %v228_v24  ;;  %v237_v35 = vrot.slane %v2485_v10, %v236_v22  ;;  %v2568_v22 = vld [vmem:[#allocation7 + $0x70] sm:$0xff] }
 0x10d   :  { %789 = vrot.lane.b32.xlu0 %v2482_v9, %s2410_s19  ;;  %v245_v36 = vrot.slane %v2485_v10, %v244_v26  ;;  %v2571_v26 = vld [vmem:[#allocation7] sm:$0xff] }
 0x10f   :  { %1292 = vrot.lane.b32.xlu1 %v2480_v7, %s2408_s2 }
 0x111   :  { %1748 = vrot.lane.b32.xlu0 %v2480_v7, %s2410_s19 }
 0x113   :  { %1746 = vrot.lane.b32.xlu1 %v2494_v12, %s2409_s4 }
 0x115   :  { %1169 = vbcast.lane.b32.xlu0 %v1166_v15, 280 }
 0x117   :  { %1177 = vbcast.lane.b32.xlu1 %v1174_v17, 280 }
 0x119   :  { %1201 = vbcast.lane.b32.xlu0 %v1198_v19, 280 }
 0x11b   :  { %1185 = vbcast.lane.b32.xlu1 %v1182_v20, 280 }
 0x11d   :  { %1652 = vbcast.lane.b32.xlu0 %v1166_v15, 312 }
 0x11f   :  { %1193 = vbcast.lane.b32.xlu1 %v1190_v23, 280 }
 0x121   :  { %1217 = vbcast.lane.b32.xlu0 %v1214_v25, 280 }
 0x123   :  { %1209 = vbcast.lane.b32.xlu1 %v1206_v27, 280 }
 0x125   :  { %1225 = vbcast.lane.b32.xlu0 %v1222_v28, 280 }
 0x127   :  { %1656 = vbcast.lane.b32.xlu1 %v1174_v17, 312 }
 0x129   :  { %192 = vbcast.lane.b32.xlu0 %v189_v29, 280 }
 0x12b   :  { %1660 = vbcast.lane.b32.xlu1 %v1182_v20, 312 }
 0x12d   :  { %208 = vbcast.lane.b32.xlu0 %v205_v30, 280 }
 0x12f   :  { %200 = vbcast.lane.b32.xlu1 %v197_v31, 280 }
 0x131   :  { %224 = vbcast.lane.b32.xlu0 %v221_v32, 280 }
 0x133   :  { %216 = vbcast.lane.b32.xlu1 %v213_v33, 280 }
 0x135   :  { %693 = vbcast.lane.b32.xlu0 %v189_v29, 312 }
 0x137   :  { %232 = vbcast.lane.b32.xlu1 %v229_v34, 280 }
 0x139   :  { %240 = vbcast.lane.b32.xlu0 %v237_v35, 280 }
 0x13b   :  { %697 = vbcast.lane.b32.xlu1 %v197_v31, 312 }
 0x13d   :  { %248 = vbcast.lane.b32.xlu0 %v245_v36, 280 }
 0x13f   :  { %701 = vbcast.lane.b32.xlu1 %v205_v30, 312 }
 0x141   :  { %709 = vbcast.lane.b32.xlu0 %v221_v32, 312 }
 0x143   :  { %705 = vbcast.lane.b32.xlu1 %v213_v33, 312  ;;  %v2578_v33 = vld [vmem:[#allocation7 + $0x10] sm:$0xff] }
 0x145   :  { %717 = vbcast.lane.b32.xlu0 %v237_v35, 312 }
 0x147   :  { %713 = vbcast.lane.b32.xlu1 %v229_v34, 312 }
 0x149   :  { %721 = vbcast.lane.b32.xlu0 %v245_v36, 312 }
 0x14b   :  { %1664 = vbcast.lane.b32.xlu1 %v1190_v23, 312 }
 0x14d   :  { %1668 = vbcast.lane.b32.xlu0 %v1198_v19, 312 }
 0x14f   :  { %1672 = vbcast.lane.b32.xlu1 %v1206_v27, 312 }
 0x151   :  { %1676 = vbcast.lane.b32.xlu0 %v1214_v25, 312 }
 0x153   :  { %1680 = vbcast.lane.b32.xlu1 %v1222_v28, 312  ;;  %v2573_v28 = vld [vmem:[#allocation7 + $0x68] sm:$0xff] }
 0x17b   :  { %v317_v37 = vpop.permute.xlu0 %316 }
 0x17c   :  { %2179 = vmatpush3.xpose.msk.msra.mxu1 %vm258_vm2, %v317_v37 }
 0x17d   :  { %v788_v38 = vpop.permute.xlu1 %787  ;;  %2183 = vmatprep.subr.mxu1 %v3012_v6 }
 0x17f   :  { %v790_v39 = vpop.permute.xlu0 %789  ;;  %2181 = vmatmul.mubr.msk.f32.vlgmr.msra.gmra.mxu1 %vm258_vm2, %v2485_v10 }
 0x180   :  { %2191 = vmatpush3.xpose.msk.msra.mxu0 %vm258_vm2, %v790_v39  ;;  %2187 = vmatprep.mubr.msk.f32.mxu1 %vm2407_vm1, %v3012_v6 }
 0x181   :  { %2202 = vmatprep.subr.mxu0 %v3012_v6  ;;  %v1293_v40 = vpop.permute.xlu1 %1292 }
 0x183   :  { %2193 = vmatmul.mubr.msk.f32.vlgmr.msra.gmra.mxu0 %vm258_vm2, %v788_v38  ;;  %v1749_v41 = vpop.permute.xlu0 %1748 }
 0x184   :  { %2203 = vmatpush3.xpose.msk.msra.mxu0 %vm258_vm2, %v1293_v40  ;;  %2204 = vmatprep.mubr.msk.f32.mxu0 %vm2407_vm1, %v3012_v6  ;;  %v2583_v40 = vld [vmem:[#allocation7 + $0x8] sm:$0xff] }
 0x185   :  { %2214 = vmatprep.subr.mxu0 %v3012_v6  ;;  %v1747_v42 = vpop.permute.xlu1 %1746 }
 0x187   :  { %2205 = vmatmul.mubr.msk.f32.vlgmr.msra.gmra.mxu0 %vm258_vm2, %v2494_v12  ;;  %v1170_v43 = vpop.permute.xlu0 %1169 }
 0x188   :  { %2215 = vmatpush3.xpose.msk.msra.mxu0 %vm258_vm2, %v1749_v41  ;;  %2216 = vmatprep.mubr.msk.f32.mxu0 %vm2407_vm1, %v3012_v6  ;;  %v1227_v59 = vmul.f32 %v1170_v43, %v2548_v56  ;;  %v2587_v43 = vld [vmem:[#allocation7 + $0x78] sm:$0xff] }
 0x189   :  { %v1178_v44 = vpop.permute.xlu1 %1177 }
 0x18a   :  { %v1228_v57 = vmul.f32 %v1178_v44, %v1153_v54  ;;  %v1235_v1 = vsel %vm258_vm2, %v1227_v59, 0.0 }
 0x18b   :  { %2217 = vmatmul.mubr.msk.f32.vlgmr.msra.gmra.mxu0 %vm258_vm2, %v1747_v42  ;;  %v1202_v45 = vpop.permute.xlu0 %1201  ;;  %v1236_v5 = vrot.slane %v1235_v1, 4 }
 0x18c   :  { %v1242_v61 = vsel %vm258_vm2, %v1228_v57, 0.0  ;;  %v1231_v4 = vmul.f32 %v1202_v45, %v2552_v63 }
 0x18d   :  { %v1186_v46 = vpop.permute.xlu1 %1185  ;;  %v1243_v2 = vrot.slane %v1242_v61, 4  ;;  %v1237_v19 = vadd.f32 %v1236_v5, %v1235_v1 }
 0x18e   :  { %v1229_v0 = vmul.f32 %v1186_v46, %v1154_v60  ;;  %v1263_v16 = vsel %vm258_vm2, %v1231_v4, 0.0 }
 0x18f   :  { %v1653_v47 = vpop.permute.xlu0 %1652  ;;  %v1244_v15 = vadd.f32 %v1243_v2, %v1242_v61  ;;  %v1264_v24 = vrot.slane %v1263_v16, 4  ;;  %v1238_v30 = vrot.slane %v1237_v19, 2  ;;  %v2601_v2 = vld [vmem:[#allocation7 + $0x20] sm:$0xff] }
 0x190   :  { %v1249_v10 = vsel %vm258_vm2, %v1229_v0, 0.0  ;;  %v1682_v12 = vmul.f32 %v1653_v47, %v2548_v56 }
 0x191   :  { %v1194_v48 = vpop.permute.xlu1 %1193  ;;  %v1250_v17 = vrot.slane %v1249_v10, 4  ;;  %v1245_v23 = vrot.slane %v1244_v15, 2  ;;  %v1265_v37 = vadd.f32 %v1264_v24, %v1263_v16  ;;  %v1239_v46 = vadd.f32 %v1238_v30, %v1237_v19 }
 0x192   :  { %v1690_v21 = vsel %vm258_vm2, %v1682_v12, 0.0  ;;  %v1230_v25 = vmul.f32 %v1194_v48, %v2563_v18 }
 0x193   :  { %v1218_v49 = vpop.permute.xlu0 %1217  ;;  %v1251_v27 = vadd.f32 %v1250_v17, %v1249_v10  ;;  %v1691_v31 = vrot.slane %v1690_v21, 4  ;;  %v1246_v36 = vadd.f32 %v1245_v23, %v1244_v15  ;;  %v1266_v59 = vrot.slane %v1265_v37, 2 }
 0x194   :  { %v1233_v32 = vmul.f32 %v1218_v49, %v2568_v22  ;;  %v1256_v38 = vsel %vm258_vm2, %v1230_v25, 0.0  ;;  %v1240_v4 = vrot.slane %v1239_v46, 1 }
 0x195   :  { %v1210_v50 = vpop.permute.xlu1 %1209  ;;  %v1252_v42 = vrot.slane %v1251_v27, 2  ;;  %v1692_v47 = vadd.f32 %v1691_v31, %v1690_v21  ;;  %v1257_v49 = vrot.slane %v1256_v38, 4  ;;  %v1247_v57 = vrot.slane %v1246_v36, 1 }
 0x196   :  { %v1232_v39 = vmul.f32 %v1210_v50, %v2573_v28  ;;  %v1277_v48 = vsel %vm258_vm2, %v1233_v32, 0.0  ;;  %v1267_v25 = vadd.f32 %v1266_v59, %v1265_v37 }
 0x197   :  { %v2546_v51 = vpop.permute.xlu0 %1225  ;;  %v1693_v12 = vrot.slane %v1692_v47, 2  ;;  %v1258_v15 = vadd.f32 %v1257_v49, %v1256_v38  ;;  %v1248_v24 = vadd.f32 %v1247_v57, %v1246_v36  ;;  %v1241_v38 = vadd.f32 %v1240_v4, %v1239_v46 }
 0x198   :  { %v1270_v61 = vsel %vm258_vm2, %v1232_v39, 0.0 }
 0x199   :  { %v1657_v52 = vpop.permute.xlu1 %1656  ;;  %v1271_v16 = vrot.slane %v1270_v61, 4  ;;  %v1694_v39 = vadd.f32 %v1693_v12, %v1692_v47  ;;  %v1302_v37 = vsel %vm326_vm3, %v1248_v24, %v1241_v38 }
 0x19a   :  { %v1683_v34 = vmul.f32 %v1657_v52, %v1153_v54 }
 0x19b   :  { %v193_v53 = vpop.permute.xlu0 %192  ;;  %v1272_v49 = vadd.f32 %v1271_v16, %v1270_v61 }
 0x19c   :  { %v250_v35 = vmul.f32 %v193_v53, %v2571_v26  ;;  %v1697_v52 = vsel %vm258_vm2, %v1683_v34, 0.0 }
 0x19d   :  { %v1661_v55 = vpop.permute.xlu1 %1660 }
 0x19e   :  { %v1684_v44 = vmul.f32 %v1661_v55, %v1154_v60  ;;  %v259_v53 = vsel %vm258_vm2, %v250_v35, 0.0  ;;  %v1234_v55 = vmul.f32 %v2546_v51, %v2587_v43  ;;  %v1278_v60 = vrot.slane %v1277_v48, 4 }
 0x19f   :  { %v209_v58 = vpop.permute.xlu0 %208  ;;  %v260_v5 = vrot.slane %v259_v53, 4 }
 0x1a0   :  { %v252_v45 = vmul.f32 %v209_v58, %v2578_v33  ;;  %v1253_v58 = vadd.f32 %v1252_v42, %v1251_v27  ;;  %v1704_v0 = vsel %vm258_vm2, %v1684_v44, 0.0  ;;  %v1284_v51 = vsel %vm258_vm2, %v1234_v55, 0.0 }
 0x1a1   :  { %v201_v62 = vpop.permute.xlu1 %200  ;;  %v1705_v19 = vrot.slane %v1704_v0, 4  ;;  %v1279_v30 = vadd.f32 %v1278_v60, %v1277_v48  ;;  %v261_v34 = vadd.f32 %v260_v5, %v259_v53  ;;  %v1259_v42 = vrot.slane %v1258_v15, 2 }
 0x1a2   :  { %v251_v50 = vmul.f32 %v201_v62, %v2583_v40  ;;  %v273_v1 = vsel %vm258_vm2, %v252_v45, 0.0  ;;  %v1698_v62 = vrot.slane %v1697_v52, 4  ;;  %v1254_v27 = vrot.slane %v1253_v58, 1  ;;  %v2609_v45 = vld [vmem:[#allocation7 + $0x18] sm:$0xff] }
 0x1a3   :  { %v2555_v3 = vpop.permute.xlu0 %224  ;;  %v274_v21 = vrot.slane %v273_v1, 4  ;;  %v1285_v44 = vrot.slane %v1284_v51, 4  ;;  %3027 = vst [vmem:[#allocation18_spill] sm:$0xff] %v2609_v45  ;;  %v1268_v48 = vrot.slane %v1267_v25, 1  ;;  %v262_v59 = vrot.slane %v261_v34, 2 }
 0x1a4   :  { %v266_v17 = vsel %vm258_vm2, %v251_v50, 0.0  ;;  %v254_v23 = vmul.f32 %v2555_v3, %v2601_v2  ;;  %v1699_v32 = vadd.f32 %v1698_v62, %v1697_v52  ;;  %v1706_v50 = vadd.f32 %v1705_v19, %v1704_v0 }
 0x1a5   :  { %v2560_v14 = vpop.permute.xlu1 %216  ;;  %v267_v35 = vrot.slane %v266_v17, 4  ;;  %v275_v55 = vadd.f32 %v274_v21, %v273_v1  ;;  %v1255_v57 = vadd.f32 %v1254_v27, %v1253_v58  ;;  %v1280_v52 = vrot.slane %v1279_v30, 2 }
 0x1a6   :  { %v287_v3 = vsel %vm258_vm2, %v254_v23, 0.0  ;;  %v1700_v53 = vrot.slane %v1699_v32, 2  ;;  %v253_v47 = vmul.f32 %v2560_v14, %v2609_v45  ;;  %v1260_v60 = vadd.f32 %v1259_v42, %v1258_v15  ;;  %v2627_v23 = vld [vmem:[#allocation7 + $0x28] sm:$0xff] }
 0x1a7   :  { %v2565_v20 = vpop.permute.xlu0 %693  ;;  %v268_v46 = vadd.f32 %v267_v35, %v266_v17  ;;  %v1286_v4 = vadd.f32 %v1285_v44, %v1284_v51  ;;  %v288_v61 = vrot.slane %v287_v3, 4  ;;  %v1695_v62 = vrot.slane %v1694_v39, 1  ;;  %3028 = vst [vmem:[#allocation19_spill] sm:$0xff] %v2627_v23 }
 0x1a8   :  { %v723_v0 = vmul.f32 %v2565_v20, %v2571_v26  ;;  %v1273_v5 = vrot.slane %v1272_v49, 2  ;;  %v1707_v12 = vrot.slane %v1706_v50, 2  ;;  %v276_v16 = vrot.slane %v275_v55, 2 }
 0x1a9   :  { %v2575_v29 = vpop.permute.xlu1 %232  ;;  %v2619_v19 = vadd.f32 %v1268_v48, %v1267_v25  ;;  %v2622_v58 = vsel %vm328_vm4, %v1255_v57, %v1302_v37  ;;  %v2624_v17 = vadd.f32 %v1280_v52, %v1279_v30  ;;  %v1701_v21 = vadd.f32 %v1700_v53, %v1699_v32 }
 0x1aa   :  { %v263_v14 = vadd.f32 %v262_v59, %v261_v34  ;;  %v269_v15 = vrot.slane %v268_v46, 2  ;;  %v280_v51 = vsel %vm258_vm2, %v253_v47, 0.0  ;;  %v1261_v24 = vrot.slane %v1260_v60, 1 }
 0x1ab   :  { %v2585_v41 = vpop.permute.xlu0 %240  ;;  %v1287_v27 = vrot.slane %v1286_v4, 2  ;;  %v289_v35 = vadd.f32 %v288_v61, %v287_v3  ;;  %v731_v25 = vsel %vm258_vm2, %v723_v0, 0.0  ;;  %v2632_v38 = vadd.f32 %v1695_v62, %v1694_v39  ;;  %v2641_v39 = vld [vmem:[#allocation7 + $0x30] sm:$0xff]  ;;  %v2649_v62 = vld [vmem:[#allocation7 + $0x38] sm:$0xff] }
 0x1ac   :  { %v2634_v42 = vadd.f32 %v1273_v5, %v1272_v49  ;;  %v1708_v30 = vadd.f32 %v1707_v12, %v1706_v50  ;;  %v277_v44 = vadd.f32 %v276_v16, %v275_v55  ;;  %v281_v34 = vrot.slane %v280_v51, 4  ;;  %3029 = vst [vmem:[#allocation20_spill] sm:$0xff] %v2641_v39  ;;  %3030 = vst [vmem:[#allocation21_spill] sm:$0xff] %v2649_v62 }
 0x1ad   :  { %v2594_v54 = vpop.permute.xlu1 %697  ;;  %v255_v37 = vmul.f32 %v2575_v29, %v2627_v23  ;;  %v1702_v52 = vrot.slane %v1701_v21, 1  ;;  %v264_v3 = vrot.slane %v263_v14, 1  ;;  %v270_v53 = vadd.f32 %v269_v15, %v268_v46 }
 0x1ae   :  { %v724_v48 = vmul.f32 %v2594_v54, %v2583_v40  ;;  %v732_v59 = vrot.slane %v731_v25, 4  ;;  %v2643_v49 = vadd.f32 %v1261_v24, %v1260_v60  ;;  %v2645_v50 = vadd.f32 %v1287_v27, %v1286_v4 }
 0x1af   :  { %v2603_v10 = vpop.permute.xlu0 %248  ;;  %v290_v55 = vrot.slane %v289_v35, 2  ;;  %v1709_v29 = vrot.slane %v1708_v30, 1  ;;  %v278_v0 = vrot.slane %v277_v44, 1  ;;  %v282_v46 = vadd.f32 %v281_v34, %v280_v51 }
 0x1b0   :  { %v294_v12 = vsel %vm258_vm2, %v255_v37, 0.0  ;;  %v256_v60 = vmul.f32 %v2585_v41, %v2641_v39  ;;  %v738_v4 = vsel %vm258_vm2, %v724_v48, 0.0  ;;  %v2656_v16 = vadd.f32 %v1702_v52, %v1701_v21 }
 0x1b1   :  { %v702_v31 = vpop.permute.xlu1 %701  ;;  %v271_v15 = vrot.slane %v270_v53, 1  ;;  %v733_v24 = vadd.f32 %v732_v59, %v731_v25  ;;  %v2658_v27 = vadd.f32 %v290_v55, %v289_v35  ;;  %v257_v8 = vmul.f32 %v2603_v10, %v2649_v62 }
 0x1b2   :  { %v725_v47 = vmul.f32 %v702_v31, %v2578_v33  ;;  %v265_v31 = vadd.f32 %v264_v3, %v263_v14  ;;  %v295_v37 = vrot.slane %v294_v12, 4  ;;  %v739_v41 = vrot.slane %v738_v4, 4 }
 0x1b3   :  { %v2612_v36 = vpop.permute.xlu0 %709  ;;  %v2667_v14 = vadd.f32 %v1709_v29, %v1708_v30  ;;  %v2669_v25 = vadd.f32 %v278_v0, %v277_v44  ;;  %v283_v35 = vrot.slane %v282_v46, 2  ;;  %v301_v52 = vsel %vm258_vm2, %v256_v60, 0.0 }
 0x1b4   :  { %v727_v51 = vmul.f32 %v2612_v36, %v2601_v2  ;;  %v272_v10 = vadd.f32 %v271_v15, %v270_v53  ;;  %v734_v3 = vrot.slane %v733_v24, 2  ;;  %v308_v6 = vsel %vm258_vm2, %v257_v8, 0.0 }
 0x1b5   :  { %v706_v1 = vpop.permute.xlu1 %705  ;;  %v296_v30 = vadd.f32 %v295_v37, %v294_v12  ;;  %v302_v29 = vrot.slane %v301_v52, 4  ;;  %v740_v44 = vadd.f32 %v739_v41, %v738_v4  ;;  %v284_v32 = vadd.f32 %v283_v35, %v282_v46 }
 0x1b6   :  { %v726_v54 = vmul.f32 %v706_v1, %v2609_v45  ;;  %v745_v1 = vsel %vm258_vm2, %v725_v47, 0.0  ;;  %v2683_v12 = vsel %vm326_vm3, %v272_v10, %v265_v31  ;;  %v735_v4 = vadd.f32 %v734_v3, %v733_v24 }
 0x1b7   :  { %v2629_v20 = vpop.permute.xlu0 %717  ;;  %v746_v59 = vrot.slane %v745_v1, 4  ;;  %v297_v46 = vrot.slane %v296_v30, 2  ;;  %v741_v35 = vrot.slane %v740_v44, 2 }
 0x1b8   :  { %v752_v48 = vsel %vm258_vm2, %v726_v54, 0.0  ;;  %v759_v54 = vsel %vm258_vm2, %v727_v51, 0.0  ;;  %v729_v53 = vmul.f32 %v2629_v20, %v2641_v39  ;;  %v736_v24 = vrot.slane %v735_v4, 1 }
 0x1b9   :  { %v714_v57 = vpop.permute.xlu1 %713  ;;  %v747_v61 = vadd.f32 %v746_v59, %v745_v1  ;;  %v760_v8 = vrot.slane %v759_v54, 4  ;;  %v298_v7 = vadd.f32 %v297_v46, %v296_v30 }
 0x1ba   :  { %v728_v21 = vmul.f32 %v714_v57, %v2627_v23  ;;  %v753_v57 = vrot.slane %v752_v48, 4 }
 0x1bb   :  { %v722_v5 = vpop.permute.xlu0 %721  ;;  %v748_v31 = vrot.slane %v747_v61, 2  ;;  %v761_v10 = vadd.f32 %v760_v8, %v759_v54 }
 0x1bc   :  { %v766_v0 = vsel %vm258_vm2, %v728_v21, 0.0  ;;  %v730_v60 = vmul.f32 %v722_v5, %v2649_v62  ;;  %v754_v37 = vadd.f32 %v753_v57, %v752_v48  ;;  %v303_v21 = vadd.f32 %v302_v29, %v301_v52 }
 0x1bd   :  { %v1665_v34 = vpop.permute.xlu1 %1664  ;;  %v767_v41 = vrot.slane %v766_v0, 4  ;;  %v742_v62 = vadd.f32 %v741_v35, %v740_v44  ;;  %v749_v39 = vadd.f32 %v748_v31, %v747_v61 }
 0x1be   :  { %v1685_v55 = vmul.f32 %v1665_v34, %v2563_v18  ;;  %v309_v34 = vrot.slane %v308_v6, 4  ;;  %v755_v48 = vrot.slane %v754_v37, 2 }
 0x1bf   :  { %v1669_v36 = vpop.permute.xlu0 %1668  ;;  %v768_v3 = vadd.f32 %v767_v41, %v766_v0  ;;  %v743_v46 = vrot.slane %v742_v62, 1  ;;  %v750_v35 = vrot.slane %v749_v39, 1 }
 0x1c0   :  { %v1686_v18 = vmul.f32 %v1669_v36, %v2552_v63  ;;  %v1711_v51 = vsel %vm258_vm2, %v1685_v55, 0.0  ;;  %v773_v63 = vsel %vm258_vm2, %v729_v53, 0.0  ;;  %v780_v36 = vsel %vm258_vm2, %v730_v60, 0.0 }
 0x1c1   :  { %v1673_v15 = vpop.permute.xlu1 %1672  ;;  %v1712_v1 = vrot.slane %v1711_v51, 4  ;;  %v285_v55 = vrot.slane %v284_v32, 1  ;;  %v310_v47 = vadd.f32 %v309_v34, %v308_v6  ;;  %v774_v29 = vrot.slane %v773_v63, 4 }
 0x1c2   :  { %v1687_v20 = vmul.f32 %v1673_v15, %v2573_v28  ;;  %v1718_v59 = vsel %vm258_vm2, %v1686_v18, 0.0  ;;  %v781_v28 = vrot.slane %v780_v36, 4  ;;  %v304_v60 = vrot.slane %v303_v21, 2 }
 0x1c3   :  { %v1677_v5 = vpop.permute.xlu0 %1676  ;;  %v1719_v15 = vrot.slane %v1718_v59, 4  ;;  %v1713_v56 = vadd.f32 %v1712_v1, %v1711_v51  ;;  %v311_v18 = vrot.slane %v310_v47, 2  ;;  %v762_v6 = vrot.slane %v761_v10, 2 }
 0x1c4   :  { %v1688_v52 = vmul.f32 %v1677_v5, %v2568_v22  ;;  %v1725_v53 = vsel %vm258_vm2, %v1687_v20, 0.0  ;;  %v756_v34 = vadd.f32 %v755_v48, %v754_v37  ;;  %v769_v8 = vrot.slane %v768_v3, 2 }
 0x1c5   :  { %v1681_v57 = vpop.permute.xlu1 %1680  ;;  %v1726_v0 = vrot.slane %v1725_v53, 4  ;;  %v286_v41 = vadd.f32 %v285_v55, %v284_v32  ;;  %v775_v5 = vadd.f32 %v774_v29, %v773_v63  ;;  %v782_v23 = vadd.f32 %v781_v28, %v780_v36 }
 0x1c6   :  { %v1689_v54 = vmul.f32 %v1681_v57, %v2587_v43  ;;  %v1732_v22 = vsel %vm258_vm2, %v1688_v52, 0.0  ;;  %v1720_v45 = vadd.f32 %v1719_v15, %v1718_v59  ;;  %v299_v20 = vrot.slane %v298_v7, 1 }
 0x1c7   :  { %v305_v30 = vadd.f32 %v304_v60, %v303_v21  ;;  %v1714_v44 = vrot.slane %v1713_v56, 2  ;;  %v312_v51 = vadd.f32 %v311_v18, %v310_v47  ;;  %v1733_v61 = vrot.slane %v1732_v22, 4 }
 0x1c8   :  { %v1739_v1 = vsel %vm258_vm2, %v1689_v54, 0.0  ;;  %v763_v43 = vadd.f32 %v762_v6, %v761_v10  ;;  %v757_v37 = vrot.slane %v756_v34, 1  ;;  %v770_v31 = vadd.f32 %v769_v8, %v768_v3 }
 0x1c9   :  { %v1727_v48 = vadd.f32 %v1726_v0, %v1725_v53  ;;  %v737_v52 = vadd.f32 %v736_v24, %v735_v4  ;;  %v776_v32 = vrot.slane %v775_v5, 2  ;;  %v783_v63 = vrot.slane %v782_v23, 2 }
 0x1ca   :  { %v1721_v36 = vrot.slane %v1720_v45, 2  ;;  %v300_v59 = vadd.f32 %v299_v20, %v298_v7  ;;  %v744_v55 = vadd.f32 %v743_v46, %v742_v62  ;;  %v1715_v21 = vadd.f32 %v1714_v44, %v1713_v56 }
 0x1cb   :  { %v1740_v57 = vrot.slane %v1739_v1, 4  ;;  %v306_v29 = vrot.slane %v305_v30, 1  ;;  %v313_v47 = vrot.slane %v312_v51, 1  ;;  %v751_v28 = vadd.f32 %v750_v35, %v749_v39 }
 0x1cc   :  { %v1734_v15 = vadd.f32 %v1733_v61, %v1732_v22  ;;  %v764_v60 = vrot.slane %v763_v43, 1  ;;  %v758_v18 = vadd.f32 %v757_v37, %v756_v34  ;;  %v771_v10 = vrot.slane %v770_v31, 1 }
 0x1cd   :  { %v1728_v6 = vrot.slane %v1727_v48, 2  ;;  %v777_v3 = vadd.f32 %v776_v32, %v775_v5  ;;  %v784_v53 = vadd.f32 %v783_v63, %v782_v23  ;;  %v1722_v4 = vadd.f32 %v1721_v36, %v1720_v45 }
 0x1ce   :  { %v329_v24 = vsel %vm328_vm4, %v2669_v25, %v2683_v12  ;;  %v799_v7 = vsel %vm326_vm3, %v744_v55, %v737_v52  ;;  %v1716_v56 = vrot.slane %v1715_v21, 1  ;;  %v1741_v62 = vadd.f32 %v1740_v57, %v1739_v1 }
 0x1cf   :  { %v331_v39 = vsel %vm330_vm5, %v286_v41, %v329_v24  ;;  %v3031_v54 = vrot.slane %v2658_v27, 1  ;;  %v307_v8 = vadd.f32 %v306_v29, %v305_v30  ;;  %v800_v0 = vsel %vm328_vm4, %v751_v28, %v799_v7 }
 0x1d0   :  { %v1735_v23 = vrot.slane %v1734_v15, 2  ;;  %v765_v45 = vadd.f32 %v764_v60, %v763_v43  ;;  %v772_v22 = vadd.f32 %v771_v10, %v770_v31  ;;  %v1729_v5 = vadd.f32 %v1728_v6, %v1727_v48 }
 0x1d1   :  { %v293_v34 = vadd.f32 %v3031_v54, %v2658_v27  ;;  %v801_v25 = vsel %vm330_vm5, %v758_v18, %v800_v0  ;;  %v778_v12 = vrot.slane %v777_v3, 1  ;;  %v785_v20 = vrot.slane %v784_v53, 1 }
 0x1d2   :  { %v1723_v46 = vrot.slane %v1722_v4, 1  ;;  %v1717_v35 = vadd.f32 %v1716_v56, %v1715_v21  ;;  %v1742_v41 = vrot.slane %v1741_v62, 2  ;;  %v314_v61 = vadd.f32 %v313_v47, %v312_v51 }
 0x1d3   :  { %v333_v44 = vsel %vm332_vm6, %v293_v34, %v331_v39  ;;  %v1289_v27 = vrot.slane %v2645_v50, 1  ;;  %v1736_v30 = vadd.f32 %v1735_v23, %v1734_v15  ;;  %v802_v37 = vsel %vm332_vm6, %v765_v45, %v801_v25  ;;  %v2136_v45 = vld [vmem:[#allocation5 + $0x1] ss:$0 sm:$0xff] }
 0x1d4   :  { %v335_v1 = vsel %vm334_vm7, %v300_v59, %v333_v44  ;;  %v1304_v43 = vsel %vm330_vm5, %v2643_v49, %v2622_v58  ;;  %v3032_v31 = vrot.slane %v2634_v42, 1  ;;  %v1758_v52 = vsel %vm326_vm3, %v2656_v16, %v2632_v38 }
 0x1d5   :  { %v1730_v51 = vrot.slane %v1729_v5, 1  ;;  %v803_v32 = vsel %vm334_vm7, %v772_v22, %v802_v37  ;;  %v1759_v63 = vsel %vm328_vm4, %v2667_v14, %v1758_v52  ;;  %v779_v36 = vadd.f32 %v778_v12, %v777_v3 }
 0x1d6   :  { %v1276_v48 = vadd.f32 %v3032_v31, %v2634_v42  ;;  %v1724_v59 = vadd.f32 %v1723_v46, %v1722_v4  ;;  %v337_v55 = vsel %vm336_vm8, %v307_v8, %v335_v1  ;;  %v1743_v21 = vadd.f32 %v1742_v41, %v1741_v62  ;;  %v2129_v42 = vld [vmem:[#allocation5] ss:$0 sm:$0xff] }
 0x1d7   :  { %v339_v58 = vsel %vm338_vm9, %v314_v61, %v337_v55  ;;  %v786_v57 = vadd.f32 %v785_v20, %v784_v53  ;;  %v1760_v29 = vsel %vm330_vm5, %v1717_v35, %v1759_v63  ;;  %v1737_v47 = vrot.slane %v1736_v30, 1 }
 0x1d8   :  { %v804_v16 = vsel %vm336_vm8, %v779_v36, %v803_v32  ;;  %v1305_v28 = vsel %vm332_vm6, %v2619_v19, %v1304_v43  ;;  %v1731_v14 = vadd.f32 %v1730_v51, %v1729_v5  ;;  %v3033_v18 = vrot.slane %v2624_v17, 1 }
 0x1d9   :  { %v1306_v60 = vsel %vm334_vm7, %v1276_v48, %v1305_v28  ;;  %v1761_v3 = vsel %vm332_vm6, %v1724_v59, %v1760_v29  ;;  %v1744_v53 = vrot.slane %v1743_v21, 1  ;;  %v805_v4 = vsel %vm338_vm9, %v786_v57, %v804_v16 }
 0x1da   :  { %v1283_v10 = vadd.f32 %v3033_v18, %v2624_v17  ;;  %v1290_v7 = vadd.f32 %v1289_v27, %v2645_v50  ;;  %v1738_v56 = vadd.f32 %v1737_v47, %v1736_v30  ;;  %v1762_v34 = vsel %vm334_vm7, %v1731_v14, %v1761_v3  ;;  %v175_v27 = vld [vmem:[#allocation10] sm:$0xff] }
 0x1db   :  { %v1745_v23 = vadd.f32 %v1744_v53, %v1743_v21 }
 0x1dc   :  { %v1307_v39 = vsel %vm336_vm8, %v1283_v10, %v1306_v60  ;;  %v1763_v50 = vsel %vm336_vm8, %v1738_v56, %v1762_v34 }
 0x1dd   :  { %v1308_v8 = vsel %vm338_vm9, %v1290_v7, %v1307_v39  ;;  %v1764_v20 = vsel %vm338_vm9, %v1745_v23, %v1763_v50 }
 0x23f   :  { %v412_v49 = vpop.f32.mrf.mxu1 }
 0x240   :  { %v413_v38 = vadd.f32 %v412_v49, %v339_v58 }
 0x241   :  { %v2182_v15 = vpop.f32.mrf.mxu1 }
 0x242   :  { %v422_v6 = vadd.f32 %v2129_v42, %v413_v38  ;;  %v3034_v15 = vmov 0.0  }
 0x243   :  { %v877_v24 = vpop.f32.mrf.mxu0 }
 0x244   :  { %v878_v62 = vadd.f32 %v877_v24, %v805_v4  ;;  %v423_v19 = vsel %vm258_vm2, %v422_v6, -inf }
 0x245   :  { %v2194_v54 = vpop.f32.mrf.mxu0  ;;  %424 = vmax.xlane.f32.xlu0 %v423_v19 }
 0x246   :  { %v881_v17 = vadd.f32 %v2129_v42, %v878_v62 }
 0x247   :  { %v1381_v0 = vpop.f32.mrf.mxu0 }
 0x248   :  { %v1382_v22 = vadd.f32 %v1381_v0, %v1308_v8  ;;  %v882_v5 = vsel %vm258_vm2, %v881_v17, -inf }
 0x249   :  { %v2206_v25 = vpop.f32.mrf.mxu0  ;;  %883 = vmax.xlane.f32.xlu1 %v882_v5 }
 0x24a   :  { %v1391_v12 = vadd.f32 %v2136_v45, %v1382_v22 }
 0x24b   :  { %v1836_v46 = vpop.f32.mrf.mxu0 }
 0x24c   :  { %v1837_v44 = vadd.f32 %v1836_v46, %v1764_v20  ;;  %v1392_v35 = vsel %vm258_vm2, %v1391_v12, -inf }
 0x24d   :  { %v2218_v41 = vpop.f32.mrf.mxu0  ;;  %1393 = vmax.xlane.f32.xlu0 %v1392_v35 }
 0x24e   :  { %v1840_v61 = vadd.f32 %v2136_v45, %v1837_v44 }
 0x250   :  { %v1841_v1 = vsel %vm258_vm2, %v1840_v61, -inf }
 0x251   :  { %1842 = vmax.xlane.f32.xlu0 %v1841_v1 }
 0x25a   :  { %609 = vrot.lane.b32.xlu1 %v175_v27, %s2398_s21  ;;  %s2413_s21 = smov 80  }
 0x267   :  { %1064 = vrot.lane.b32.xlu0 %v175_v27, %s2411_s20 }
 0x2ce   :  { %v425_v30 = vpop.xlane.xlu0 %424 }
 0x2cf   :  { %v426_v36 = vsub.f32 %v422_v6, %v425_v30  ;;  %v2414_v6 = vmov 1966171168  }
 0x2d0   :  { %v437_v3 = vunpack.c.l.s4 %v2414_v6 }
 0x2d1   :  { %v427_v21 = vmul.f32 1.442695, %v426_v36 }
 0x2d2   :  { %v884_v37 = vpop.xlane.xlu1 %883  ;;  %v438_v4 = vunpack.c.0.s8 %v437_v3 }
 0x2d3   :  { %v885_v43 = vsub.f32 %v881_v17, %v884_v37 }
 0x2d5   :  { %v886_v31 = vmul.f32 1.442695, %v885_v43 }
 0x2d6   :  { %v610_v48 = vpop.permute.xlu1 %609  ;;  %v1394_v52 = vpop.xlane.xlu0 %1393 }
 0x2d7   :  { %2245 = vpow2.f32 %v886_v31  ;;  %613 = vrot.lane.b32.xlu1 %v610_v48, %s2412_s22  ;;  %v1395_v58 = vsub.f32 %v1391_v12, %v1394_v52 }
 0x2d9   :  { %v1396_v49 = vmul.f32 1.442695, %v1395_v58 }
 0x2da   :  { %v1843_v51 = vpop.xlane.xlu0 %1842 }
 0x2db   :  { %v1844_v32 = vsub.f32 %v1840_v61, %v1843_v51 }
 0x2dd   :  { %v1845_v63 = vmul.f32 1.442695, %v1844_v32 }
 0x2de   :  { %v1065_v28 = vpop.permute.xlu0 %1064 }
 0x2df   :  { %2247 = vpow2.f32 %v1845_v63 }
 0x2e0   :  { %2249 = vpow2.f32 %v427_v21 }
 0x2e1   :  { %2251 = vpow2.f32 %v1396_v49 }
 0x2e4   :  { %v2246_v59 = vpop.eup %2245 }
 0x2e5   :  { %v888_v55 = vsel %vm258_vm2, %v2246_v59, 0.0 }
 0x2e6   :  { %889 = vadd.xlane.f32.xlu0 %v888_v55 }
 0x2ec   :  { %v2745_v57 = vpop.eup %2247 }
 0x2ed   :  { %v1847_v42 = vsel %vm258_vm2, %v2745_v57, 0.0  ;;  %v2250_v29 = vpop.eup %2249 }
 0x2ee   :  { %1848 = vadd.xlane.f32.xlu0 %v1847_v42  ;;  %v429_v47 = vsel %vm258_vm2, %v2250_v29, 0.0  ;;  %v2750_v38 = vpop.eup %2251 }
 0x2ef   :  { %v1398_v16 = vsel %vm258_vm2, %v2750_v38, 0.0 }
 0x2fb   :  { %430 = vadd.xlane.f32.xlu1 %v429_v47 }
 0x2ff   :  { %1399 = vadd.xlane.f32.xlu1 %v1398_v16 }
 0x304   :  { %611 = vrot.lane.b32.xlu0 %v2482_v9, %s2412_s22 }
 0x310   :  { %1068 = vrot.lane.b32.xlu1 %v1065_v28, %s2413_s21 }
 0x314   :  { %1066 = vrot.lane.b32.xlu1 %v2482_v9, %s2413_s21  ;;  %v2765_v9 = vsub.s32 %v438_v4, %v2490_v11 }
 0x349   :  { %v2759_v14 = vpop.permute.xlu1 %613 }
 0x34a   :  { %2184 = vmatpush3.msra.mxu1 %v2759_v14 }
 0x34b   :  { %2185 = vmatprep.subr.mxu1 %v3034_v15 }
 0x36f   :  { %v890_v60 = vpop.xlane.xlu0 %889 }
 0x370   :  { %2253 = vrcp.f32 %v890_v60 }
 0x377   :  { %v1849_v18 = vpop.xlane.xlu0 %1848 }
 0x37b   :  { %v612_v10 = vpop.permute.xlu0 %611 }
 0x37c   :  { %2186 = vmatpush3.msra.mxu1 %v612_v10 }
 0x37d   :  { %2195 = vmatprep.subr.mxu1 %v3034_v15  ;;  %v2254_v24 = vpop.eup %2253 }
 0x37e   :  { %v2767_v7 = vmul.f32 %v2254_v24, %v2246_v59 }
 0x380   :  { %v901_v62 = vrot.slane %v2767_v7, %v2765_v9  ;;  %v894_v5 = vcombine.high %v2767_v7, %v2767_v7 }
 0x382   :  { %v909_v54 = vcombine.high %v901_v62, %v901_v62  ;;  %v917_v34 = vrot.slane %v901_v62, %v2765_v9  ;;  %v908_v1 = vrot.slane %v894_v5, %v2765_v9 }
 0x384   :  { %v431_v53 = vpop.xlane.xlu1 %430  ;;  %v931_v45 = vrot.slane %v909_v54, %v2765_v9  ;;  %v946_v22 = vrot.slane %v917_v34, %v2498_v13  ;;  %v939_v46 = vcombine.high %v917_v34, %v917_v34  ;;  %v924_v63 = vrot.slane %v908_v1, %v2765_v9  ;;  %v3036_v54 = vld [vmem:[#allocation19_spill] sm:$0xff] }
 0x385   :  { %2255 = vrcp.f32 %v431_v53  ;;  %v910_v60 = vcombine.high %v908_v1, %v908_v1 }
 0x386   :  { %v950_v41 = vrot.slane %v931_v45, %v2498_v13  ;;  %v983_v61 = vmul.f32 %v946_v22, %v2571_v26  ;;  %v954_v48 = vrot.slane %v939_v46, %v2498_v13  ;;  %v941_v3 = vcombine.high %v931_v45, %v931_v45 }
 0x387   :  { %v938_v62 = vrot.slane %v910_v60, %v2765_v9  ;;  %v940_v22 = vcombine.high %v924_v63, %v924_v63  ;;  %v2262_v60 = vld [vmem:[#allocation7 + $0x50] sm:$0xff] }
 0x388   :  { %v1400_v56 = vpop.xlane.xlu1 %1399  ;;  %v984_v51 = vmul.f32 %v950_v41, %v2583_v40  ;;  %v991_v36 = vsel %vm258_vm2, %v983_v61, 0.0 }
 0x389   :  { %2257 = vrcp.f32 %v1400_v56  ;;  %v966_v5 = vrot.slane %v938_v62, %v2498_v13  ;;  %v970_v61 = vrot.slane %v940_v22, %v2498_v13 }
 0x38a   :  { %2259 = vrcp.f32 %v1849_v18  ;;  %v994_v58 = vsel %vm258_vm2, %v984_v51, 0.0 }
 0x392   :  { %v2256_v19 = vpop.eup %2255 }
 0x393   :  { %v2771_v39 = vmul.f32 %v2256_v19, %v2250_v29  ;;  %v962_v29 = vrot.slane %v924_v63, %v2498_v13 }
 0x395   :  { %v442_v17 = vrot.slane %v2771_v39, %v2765_v9  ;;  %v435_v8 = vcombine.high %v2771_v39, %v2771_v39  ;;  %v987_v4 = vmul.f32 %v962_v29, %v2601_v2 }
 0x396   :  { %v2258_v31 = vpop.eup %2257 }
 0x397   :  { %v458_v0 = vrot.slane %v442_v17, %v2765_v9  ;;  %v450_v23 = vcombine.high %v442_v17, %v442_v17  ;;  %v449_v20 = vrot.slane %v435_v8, %v2765_v9  ;;  %v2803_v21 = vmul.f32 %v2258_v31, %v2750_v38 }
 0x398   :  { %v958_v17 = vrot.slane %v941_v3, %v2498_v13 }
 0x399   :  { %v487_v50 = vrot.slane %v458_v0, %v2498_v13  ;;  %v472_v25 = vrot.slane %v450_v23, %v2765_v9  ;;  %v480_v12 = vcombine.high %v458_v0, %v458_v0  ;;  %v465_v43 = vrot.slane %v449_v20, %v2765_v9  ;;  %v3037_v23 = vld [vmem:[#allocation20_spill] sm:$0xff] }
 0x39a   :  { %v1411_v38 = vrot.slane %v2803_v21, %v2765_v9  ;;  %v1003_v0 = vsel %vm258_vm2, %v987_v4, 0.0  ;;  %v1404_v46 = vcombine.high %v2803_v21, %v2803_v21  ;;  %v989_v51 = vmul.f32 %v970_v61, %v3037_v23 }
 0x39b   :  { %v524_v44 = vmul.f32 %v487_v50, %v2571_v26  ;;  %v491_v35 = vrot.slane %v472_v25, %v2498_v13  ;;  %v495_v37 = vrot.slane %v480_v12, %v2498_v13  ;;  %v482_v32 = vcombine.high %v472_v25, %v472_v25  ;;  %v2260_v50 = vpop.eup %2259 }
 0x39c   :  { %v451_v26 = vcombine.high %v449_v20, %v449_v20  ;;  %v503_v55 = vrot.slane %v465_v43, %v2498_v13  ;;  %v481_v28 = vcombine.high %v465_v43, %v465_v43  ;;  %v1427_v56 = vrot.slane %v1411_v38, %v2765_v9 }
 0x39d   :  { %v532_v27 = vsel %vm258_vm2, %v524_v44, 0.0  ;;  %v525_v30 = vmul.f32 %v491_v35, %v2583_v40  ;;  %v526_v59 = vmul.f32 %v495_v37, %v2578_v33  ;;  %v985_v40 = vmul.f32 %v954_v48, %v2578_v33  ;;  %v3035_v33 = vld [vmem:[#allocation18_spill] sm:$0xff]  ;;  %v3038_v35 = vld [vmem:[#allocation17_spill] sm:$0xff] }
 0x39e   :  { %533 = vadd.xlane.f32.xlu1 %v532_v27  ;;  %v499_v49 = vrot.slane %v482_v32, %v2498_v13  ;;  %v479_v42 = vrot.slane %v451_v26, %v2765_v9  ;;  %v528_v16 = vmul.f32 %v503_v55, %v2601_v2  ;;  %v511_v24 = vrot.slane %v481_v28, %v2498_v13 }
 0x39f   :  { %v535_v52 = vsel %vm258_vm2, %v525_v30, 0.0  ;;  %v538_v47 = vsel %vm258_vm2, %v526_v59, 0.0  ;;  %v997_v18 = vsel %vm258_vm2, %v985_v40, 0.0  ;;  %v1419_v8 = vcombine.high %v1411_v38, %v1411_v38 }
 0x3a0   :  { %536 = vadd.xlane.f32.xlu0 %v535_v52  ;;  %v527_v10 = vmul.f32 %v499_v49, %v3035_v33  ;;  %v507_v6 = vrot.slane %v479_v42, %v2498_v13  ;;  %v544_v53 = vsel %vm258_vm2, %v528_v16, 0.0  ;;  %v530_v45 = vmul.f32 %v511_v24, %v3037_v23 }
 0x3a1   :  { %v1456_v2 = vrot.slane %v1427_v56, %v2498_v13  ;;  %v986_v12 = vmul.f32 %v958_v17, %v3035_v33  ;;  %v1441_v20 = vrot.slane %v1419_v8, %v2765_v9  ;;  %v483_v1 = vcombine.high %v479_v42, %v479_v42  ;;  %v3039_v42 = vld [vmem:[#allocation21_spill] sm:$0xff] }
 0x3a2   :  { %992 = vadd.xlane.f32.xlu1 %v991_v36  ;;  %v541_v19 = vsel %vm258_vm2, %v527_v10, 0.0  ;;  %v529_v34 = vmul.f32 %v507_v6, %v3036_v54  ;;  %v550_v44 = vsel %vm258_vm2, %v530_v45, 0.0  ;;  %v988_v27 = vmul.f32 %v966_v5, %v3036_v54  ;;  %v2261_v36 = vld [vmem:[#allocation7 + $0x48] sm:$0xff]  ;;  %v2264_v8 = vld [vmem:[#allocation7 + $0x60] sm:$0xff] }
 0x3a3   :  { %v1493_v41 = vmul.f32 %v1456_v2, %v3038_v35  ;;  %v2839_v30 = vmul.f32 %v2260_v50, %v2745_v57  ;;  %v1000_v37 = vsel %vm258_vm2, %v986_v12, 0.0  ;;  %v1460_v43 = vrot.slane %v1441_v20, %v2498_v13  ;;  %v2265_v5 = vld [vmem:[#allocation7 + $0x68] sm:$0xff] }
 0x3a4   :  { %995 = vadd.xlane.f32.xlu0 %v994_v58  ;;  %v547_v25 = vsel %vm258_vm2, %v529_v34, 0.0  ;;  %v1449_v31 = vcombine.high %v1427_v56, %v1427_v56  ;;  %v1418_v48 = vrot.slane %v1404_v46, %v2765_v9  ;;  %v515_v32 = vrot.slane %v483_v1, %v2498_v13  ;;  %v2266_v46 = vld [vmem:[#allocation7 + $0x40] sm:$0xff] }
 0x3a5   :  { %v1501_v52 = vsel %vm258_vm2, %v1493_v41, 0.0  ;;  %v942_v26 = vcombine.high %v938_v62, %v938_v62  ;;  %v1006_v63 = vsel %vm258_vm2, %v988_v27, 0.0  ;;  %v1860_v57 = vrot.slane %v2839_v30, %v2765_v9  ;;  %v2263_v62 = vld [vmem:[#allocation7 + $0x58] sm:$0xff] }
 0x3a6   :  { %539 = vadd.xlane.f32.xlu1 %v538_v47  ;;  %v1494_v59 = vmul.f32 %v2261_v36, %v1460_v43  ;;  %v1464_v55 = vrot.slane %v1449_v31, %v2498_v13  ;;  %v1451_v58 = vcombine.high %v1441_v20, %v1441_v20  ;;  %v1420_v40 = vcombine.high %v1418_v48, %v1418_v48 }
 0x3a7   :  { %v1009_v49 = vsel %vm258_vm2, %v989_v51, 0.0  ;;  %v531_v29 = vmul.f32 %v515_v32, %v3039_v42  ;;  %v974_v47 = vrot.slane %v942_v26, %v2498_v13  ;;  %v1434_v16 = vrot.slane %v1418_v48, %v2765_v9  ;;  %v2267_v48 = vld [vmem:[#allocation7 + $0x70] sm:$0xff] }
 0x3a8   :  { %998 = vadd.xlane.f32.xlu0 %v997_v18  ;;  %v1868_v28 = vcombine.high %v1860_v57, %v1860_v57  ;;  %v1504_v38 = vsel %vm258_vm2, %v1494_v59, 0.0  ;;  %v1495_v18 = vmul.f32 %v2262_v60, %v1464_v55  ;;  %v1468_v33 = vrot.slane %v1451_v58, %v2498_v13  ;;  %v2268_v55 = vld [vmem:[#allocation7 + $0x78] sm:$0xff] }
 0x3a9   :  { %v1448_v10 = vrot.slane %v1420_v40, %v2765_v9  ;;  %v553_v6 = vsel %vm258_vm2, %v531_v29, 0.0  ;;  %v990_v3 = vmul.f32 %v974_v47, %v3039_v42  ;;  %v1876_v4 = vrot.slane %v1860_v57, %v2765_v9 }
 0x3aa   :  { %545 = vadd.xlane.f32.xlu1 %v544_v53  ;;  %v1472_v53 = vrot.slane %v1434_v16, %v2498_v13  ;;  %v1853_v24 = vcombine.high %v2839_v30, %v2839_v30  ;;  %v1507_v56 = vsel %vm258_vm2, %v1495_v18, 0.0  ;;  %v1890_v34 = vrot.slane %v1868_v28, %v2765_v9 }
 0x3ab   :  { %v1476_v54 = vrot.slane %v1448_v10, %v2498_v13  ;;  %v1012_v17 = vsel %vm258_vm2, %v990_v3, 0.0  ;;  %v1905_v23 = vrot.slane %v1876_v4, %v2498_v13  ;;  %v1450_v45 = vcombine.high %v1434_v16, %v1434_v16 }
 0x3ac   :  { %542 = vadd.xlane.f32.xlu0 %v541_v19  ;;  %v1496_v19 = vmul.f32 %v2263_v62, %v1468_v33  ;;  %v1867_v2 = vrot.slane %v1853_v24, %v2765_v9  ;;  %v1898_v12 = vcombine.high %v1876_v4, %v1876_v4  ;;  %v1452_v41 = vcombine.high %v1448_v10, %v1448_v10 }
 0x3ad   :  { %v1498_v50 = vmul.f32 %v2265_v5, %v1476_v54  ;;  %v1480_v35 = vrot.slane %v1450_v45, %v2498_v13  ;;  %v1900_v43 = vcombine.high %v1890_v34, %v1890_v34 }
 0x3ae   :  { %1004 = vadd.xlane.f32.xlu1 %v1003_v0  ;;  %v1497_v0 = vmul.f32 %v2264_v8, %v1472_v53  ;;  %v1510_v22 = vsel %vm258_vm2, %v1496_v19, 0.0  ;;  %v1869_v61 = vcombine.high %v1867_v2, %v1867_v2  ;;  %v1484_v51 = vrot.slane %v1452_v41, %v2498_v13 }
 0x3af   :  { %v1516_v1 = vsel %vm258_vm2, %v1498_v50, 0.0  ;;  %v1883_v32 = vrot.slane %v1867_v2, %v2765_v9  ;;  %v1917_v57 = vrot.slane %v1900_v43, %v2498_v13 }
 0x3b0   :  { %548 = vadd.xlane.f32.xlu0 %v547_v25  ;;  %v1909_v25 = vrot.slane %v1890_v34, %v2498_v13  ;;  %v1513_v20 = vsel %vm258_vm2, %v1497_v0, 0.0  ;;  %v1500_v58 = vmul.f32 %v2268_v55, %v1484_v51 }
 0x3b1   :  { %v1921_v40 = vrot.slane %v1883_v32, %v2498_v13  ;;  %v1945_v29 = vmul.f32 %v2263_v62, %v1917_v57 }
 0x3b2   :  { %551 = vadd.xlane.f32.xlu1 %v550_v44  ;;  %v1942_v44 = vmul.f32 %v2266_v46, %v1905_v23  ;;  %v1943_v27 = vmul.f32 %v2261_v36, %v1909_v25  ;;  %v1897_v36 = vrot.slane %v1869_v61, %v2765_v9  ;;  %v1522_v28 = vsel %vm258_vm2, %v1500_v58, 0.0 }
 0x3b3   :  { %v3041_v23 = vlaneseq }
 0x3b4   :  { %1001 = vadd.xlane.f32.xlu0 %v1000_v37  ;;  %v1913_v37 = vrot.slane %v1898_v12, %v2498_v13  ;;  %v1950_v31 = vsel %vm258_vm2, %v1942_v44, 0.0  ;;  %v1953_v26 = vsel %vm258_vm2, %v1943_v27, 0.0  ;;  %v1925_v47 = vrot.slane %v1897_v36, %v2498_v13 }
 0x3b5   :  { %v1901_v16 = vcombine.high %v1897_v36, %v1897_v36  ;;  %v565_v45 = vand.u32 127, %v3041_v23 }
 0x3b6   :  { %1502 = vadd.xlane.f32.xlu1 %v1501_v52  ;;  %v1499_v52 = vmul.f32 %v2267_v48, %v1480_v35  ;;  %v1947_v18 = vmul.f32 %v2265_v5, %v1925_v47 }
 0x3b7   :  { %v1933_v33 = vrot.slane %v1901_v16, %v2498_v13  ;;  %v566_v5 = vadd.s32 4294967288, %v565_v45 }
 0x3b8   :  { %1007 = vadd.xlane.f32.xlu0 %v1006_v63  ;;  %v1944_v63 = vmul.f32 %v2262_v60, %v1913_v37  ;;  %v1519_v59 = vsel %vm258_vm2, %v1499_v52, 0.0  ;;  %v1959_v60 = vsel %vm258_vm2, %v1945_v29, 0.0  ;;  %v1965_v3 = vsel %vm258_vm2, %v1947_v18, 0.0 }
 0x3b9   :  { %v1949_v53 = vmul.f32 %v2268_v55, %v1933_v33  ;;  %v2902_v12 = vsub.s32 %v566_v5, %v2490_v11 }
 0x3ba   :  { %1010 = vadd.xlane.f32.xlu1 %v1009_v49  ;;  %v1899_v49 = vcombine.high %v1883_v32, %v1883_v32  ;;  %v1956_v42 = vsel %vm258_vm2, %v1944_v63, 0.0 }
 0x3bb   :  { %v1971_v24 = vsel %vm258_vm2, %v1949_v53, 0.0 }
 0x3bc   :  { %1505 = vadd.xlane.f32.xlu0 %v1504_v38  ;;  %v1946_v38 = vmul.f32 %v2264_v8, %v1921_v40  ;;  %v1929_v9 = vrot.slane %v1899_v49, %v2498_v13  ;;  %v2898_v13 = vpop.permute.xlu1 %1068 }
 0x3be   :  { %554 = vadd.xlane.f32.xlu1 %v553_v6  ;;  %v1962_v10 = vsel %vm258_vm2, %v1946_v38, 0.0  ;;  %v1948_v6 = vmul.f32 %v2267_v48, %v1929_v9 }
 0x3c0   :  { %1508 = vadd.xlane.f32.xlu0 %v1507_v56  ;;  %v1968_v4 = vsel %vm258_vm2, %v1948_v6, 0.0  ;;  %v3040_v56 = vld [vmem:[#allocation16_spill] sm:$0xff]  ;;  %v1067_v62 = vpop.permute.xlu1 %1066 }
 0x3c2   :  { %1013 = vadd.xlane.f32.xlu1 %v1012_v17 }
 0x3c4   :  { %1511 = vadd.xlane.f32.xlu0 %v1510_v22 }
 0x3c6   :  { %1514 = vadd.xlane.f32.xlu1 %v1513_v20 }
 0x3c8   :  { %1517 = vadd.xlane.f32.xlu0 %v1516_v1 }
 0x3ca   :  { %1951 = vadd.xlane.f32.xlu1 %v1950_v31 }
 0x3cc   :  { %1954 = vadd.xlane.f32.xlu0 %v1953_v26 }
 0x3ce   :  { %1520 = vadd.xlane.f32.xlu1 %v1519_v59 }
 0x3d0   :  { %1957 = vadd.xlane.f32.xlu0 %v1956_v42 }
 0x3d2   :  { %1523 = vadd.xlane.f32.xlu1 %v1522_v28 }
 0x3d4   :  { %1960 = vadd.xlane.f32.xlu0 %v1959_v60 }
 0x3d6   :  { %1963 = vadd.xlane.f32.xlu1 %v1962_v10 }
 0x3d8   :  { %1966 = vadd.xlane.f32.xlu0 %v1965_v3 }
 0x3da   :  { %1969 = vadd.xlane.f32.xlu1 %v1968_v4 }
 0x3dc   :  { %1972 = vadd.xlane.f32.xlu0 %v1971_v24 }
 0x3eb   :  { %2023 = vrot.lane.b32.xlu1 %v3040_v56, %s2413_s21 }
 0x3f2   :  { %1574 = vrot.lane.b32.xlu0 %v3040_v56, %s2412_s22 }
 0x427   :  { %v534_v19 = vpop.xlane.xlu1 %533 }
 0x428   :  { %v570_v41 = vrot.slane %v534_v19, %v2902_v12 }
 0x429   :  { %v537_v54 = vpop.xlane.xlu0 %536 }
 0x42a   :  { %v574_v46 = vrot.slane %v537_v54, %v2902_v12 }
 0x42b   :  { %v993_v34 = vpop.xlane.xlu1 %992 }
 0x42c   :  { %v599_v27 = vsel %vm326_vm3, %v574_v46, %v570_v41  ;;  %v1026_v48 = vrot.slane %v993_v34, %v2902_v12 }
 0x42d   :  { %v996_v17 = vpop.xlane.xlu0 %995 }
 0x42e   :  { %v1030_v37 = vrot.slane %v996_v17, %v2902_v12 }
 0x42f   :  { %v540_v8 = vpop.xlane.xlu1 %539 }
 0x430   :  { %v578_v44 = vrot.slane %v540_v8, %v2902_v12  ;;  %v1055_v57 = vsel %vm326_vm3, %v1030_v37, %v1026_v48 }
 0x431   :  { %v999_v0 = vpop.xlane.xlu0 %998 }
 0x432   :  { %v600_v43 = vsel %vm328_vm4, %v578_v44, %v599_v27  ;;  %v1034_v11 = vrot.slane %v999_v0, %v2902_v12 }
 0x433   :  { %v546_v2 = vpop.xlane.xlu1 %545 }
 0x434   :  { %v586_v26 = vrot.slane %v546_v2, %v2902_v12  ;;  %v1056_v36 = vsel %vm328_vm4, %v1034_v11, %v1055_v57 }
 0x435   :  { %v543_v22 = vpop.xlane.xlu0 %542 }
 0x436   :  { %v582_v61 = vrot.slane %v543_v22, %v2902_v12 }
 0x437   :  { %v1005_v50 = vpop.xlane.xlu1 %1004 }
 0x438   :  { %v601_v52 = vsel %vm330_vm5, %v582_v61, %v600_v43  ;;  %v1042_v29 = vrot.slane %v1005_v50, %v2902_v12 }
 0x439   :  { %v549_v25 = vpop.xlane.xlu0 %548  ;;  %v602_v59 = vsel %vm332_vm6, %v586_v26, %v601_v52 }
 0x43a   :  { %v590_v51 = vrot.slane %v549_v25, %v2902_v12 }
 0x43b   :  { %v552_v20 = vpop.xlane.xlu1 %551 }
 0x43c   :  { %v594_v55 = vrot.slane %v552_v20, %v2902_v12  ;;  %v603_v40 = vsel %vm334_vm7, %v590_v51, %v602_v59 }
 0x43d   :  { %v1002_v35 = vpop.xlane.xlu0 %1001 }
 0x43e   :  { %v1038_v32 = vrot.slane %v1002_v35, %v2902_v12  ;;  %v604_v28 = vsel %vm336_vm8, %v594_v55, %v603_v40 }
 0x43f   :  { %v2908_v1 = vpop.xlane.xlu1 %1502 }
 0x440   :  { %v1057_v49 = vsel %vm330_vm5, %v1038_v32, %v1056_v36  ;;  %v1536_v23 = vrot.slane %v2908_v1, %v2902_v12 }
 0x441   :  { %v1008_v31 = vpop.xlane.xlu0 %1007  ;;  %v1058_v38 = vsel %vm332_vm6, %v1042_v29, %v1057_v49 }
 0x442   :  { %v1046_v42 = vrot.slane %v1008_v31, %v2902_v12 }
 0x443   :  { %v1011_v63 = vpop.xlane.xlu1 %1010 }
 0x444   :  { %v1050_v9 = vrot.slane %v1011_v63, %v2902_v12  ;;  %v1059_v18 = vsel %vm334_vm7, %v1046_v42, %v1058_v38 }
 0x445   :  { %v1506_v58 = vpop.xlane.xlu0 %1505 }
 0x446   :  { %v1060_v53 = vsel %vm336_vm8, %v1050_v9, %v1059_v18 }
 0x447   :  { %v555_v47 = vpop.xlane.xlu1 %554 }
 0x448   :  { %v598_v16 = vrot.slane %v555_v47, %v2902_v12 }
 0x449   :  { %v1509_v60 = vpop.xlane.xlu0 %1508 }
 0x44a   :  { %v605_v33 = vsel %vm338_vm9, %v598_v16, %v604_v28 }
 0x44b   :  { %v1014_v10 = vpop.xlane.xlu1 %1013  ;;  %v607_v6 = vsel %vm258_vm2, %v2771_v39, %v605_v33 }
 0x44c   :  { %v1054_v3 = vrot.slane %v1014_v10, %v2902_v12  ;;  %2188 = vmatmul.mubr.msk.f32.vlgmr.msra.gmra.mxu1 %vm617_vm10, %v607_v6 }
 0x44d   :  { %2196 = vmatpush3.msra.mxu1 %v2898_v13  ;;  %v1512_v4 = vpop.xlane.xlu0 %1511  ;;  %2199 = vmatprep.mubr.msk.f32.mxu1 %vm2407_vm1, %v3034_v15 }
 0x44e   :  { %v1061_v24 = vsel %vm338_vm9, %v1054_v3, %v1060_v53  ;;  %2197 = vmatprep.subr.mxu1 %v3034_v15 }
 0x44f   :  { %2198 = vmatpush3.msra.mxu1 %v1067_v62  ;;  %v1515_v56 = vpop.xlane.xlu1 %1514  ;;  %v1063_v39 = vsel %vm258_vm2, %v2767_v7, %v1061_v24  ;;  %v1540_v62 = vrot.slane %v1506_v58, %v2902_v12  ;;  %v1544_v7 = vrot.slane %v1509_v60, %v2902_v12 }
 0x450   :  { %2207 = vmatprep.subr.mxu1 %v3034_v15  ;;  %2200 = vmatmul.mubr.msk.f32.vlgmr.msra.gmra.mxu1 %vm617_vm10, %v1063_v39  ;;  %v1552_v20 = vrot.slane %v1515_v56, %v2902_v12 }
 0x451   :  { %2208 = vmatpush3.msra.mxu1 %v2759_v14  ;;  %v1518_v19 = vpop.xlane.xlu0 %1517  ;;  %2211 = vmatprep.mubr.msk.f32.mxu1 %vm2407_vm1, %v3034_v15  ;;  %v1548_v14 = vrot.slane %v1512_v4, %v2902_v12  ;;  %v1565_v5 = vsel %vm326_vm3, %v1540_v62, %v1536_v23 }
 0x452   :  { %2209 = vmatprep.subr.mxu1 %v3034_v15  ;;  %v1566_v25 = vsel %vm328_vm4, %v1544_v7, %v1565_v5  ;;  %v1556_v37 = vrot.slane %v1518_v19, %v2902_v12 }
 0x453   :  { %v1952_v54 = vpop.xlane.xlu1 %1951  ;;  %v1567_v35 = vsel %vm330_vm5, %v1548_v14, %v1566_v25 }
 0x454   :  { %v1985_v22 = vrot.slane %v1952_v54, %v2902_v12  ;;  %v1568_v11 = vsel %vm332_vm6, %v1552_v20, %v1567_v35 }
 0x455   :  { %v1955_v34 = vpop.xlane.xlu0 %1954  ;;  %v1569_v63 = vsel %vm334_vm7, %v1556_v37, %v1568_v11 }
 0x456   :  { %v1989_v0 = vrot.slane %v1955_v34, %v2902_v12 }
 0x457   :  { %v1521_v17 = vpop.xlane.xlu1 %1520 }
 0x458   :  { %v2014_v46 = vsel %vm326_vm3, %v1989_v0, %v1985_v22  ;;  %v1560_v31 = vrot.slane %v1521_v17, %v2902_v12 }
 0x459   :  { %v1958_v8 = vpop.xlane.xlu0 %1957 }
 0x45a   :  { %v1993_v45 = vrot.slane %v1958_v8, %v2902_v12  ;;  %v1570_v59 = vsel %vm336_vm8, %v1560_v31, %v1569_v63 }
 0x45b   :  { %v1524_v2 = vpop.xlane.xlu1 %1523 }
 0x45c   :  { %v2015_v41 = vsel %vm328_vm4, %v1993_v45, %v2014_v46  ;;  %v1564_v51 = vrot.slane %v1524_v2, %v2902_v12 }
 0x45d   :  { %v1961_v50 = vpop.xlane.xlu0 %1960 }
 0x45e   :  { %v1997_v44 = vrot.slane %v1961_v50, %v2902_v12  ;;  %v1571_v55 = vsel %vm338_vm9, %v1564_v51, %v1570_v59 }
 0x45f   :  { %v1964_v61 = vpop.xlane.xlu1 %1963  ;;  %v1573_v42 = vsel %vm258_vm2, %v2803_v21, %v1571_v55 }
 0x460   :  { %v2016_v1 = vsel %vm330_vm5, %v1997_v44, %v2015_v41  ;;  %v2001_v27 = vrot.slane %v1964_v61, %v2902_v12 }
 0x461   :  { %v1967_v43 = vpop.xlane.xlu0 %1966 }
 0x462   :  { %v2017_v48 = vsel %vm332_vm6, %v2001_v27, %v2016_v1  ;;  %v2005_v52 = vrot.slane %v1967_v43, %v2902_v12 }
 0x463   :  { %v1970_v32 = vpop.xlane.xlu1 %1969 }
 0x464   :  { %v2009_v26 = vrot.slane %v1970_v32, %v2902_v12  ;;  %v2018_v57 = vsel %vm334_vm7, %v2005_v52, %v2017_v48 }
 0x465   :  { %v1973_v36 = vpop.xlane.xlu0 %1972 }
 0x466   :  { %v2013_v58 = vrot.slane %v1973_v36, %v2902_v12  ;;  %v2019_v40 = vsel %vm336_vm8, %v2009_v26, %v2018_v57 }
 0x467   :  { %v2024_v47 = vpop.permute.xlu1 %2023 }
 0x468   :  { %v2020_v29 = vsel %vm338_vm9, %v2013_v58, %v2019_v40 }
 0x469   :  { %v1575_v49 = vpop.permute.xlu0 %1574  ;;  %v2022_v12 = vsel %vm258_vm2, %v2839_v30, %v2020_v29 }
 0x46a   :  { %2210 = vmatpush3.msra.mxu1 %v1575_v49 }
 0x46b   :  { %2212 = vmatmul.mubr.msk.f32.vlgmr.msra.gmra.mxu1 %vm617_vm10, %v1573_v42  ;;  %2219 = vmatprep.subr.mxu1 %v3034_v15 }
 0x46c   :  { %2220 = vmatpush3.msra.mxu1 %v2898_v13  ;;  %2223 = vmatprep.mubr.msk.f32.mxu1 %vm2407_vm1, %v3034_v15 }
 0x46d   :  { %2221 = vmatprep.subr.mxu1 %v3034_v15 }
 0x46e   :  { %2222 = vmatpush3.msra.mxu1 %v2024_v47 }
 0x46f   :  { %2224 = vmatmul.mubr.msk.f32.vlgmr.msra.gmra.mxu1 %vm617_vm10, %v2022_v12 }
 0x50c   :  { %v687_v21 = vpop.f32.mrf.mxu1 }
 0x50e   :  { %v2189_v16 = vpop.f32.mrf.mxu1 }
 0x510   :  { %v1141_v28 = vpop.f32.mrf.mxu1 }
 0x511   :  { %1146 = vrot.lane.b32.xlu0 %v1141_v28, %s2403_s6 }
 0x512   :  { %v2201_v38 = vpop.f32.mrf.mxu1 }
 0x52b   :  { %v1646_v9 = vpop.f32.mrf.mxu1 }
 0x52d   :  { %v2213_v13 = vpop.f32.mrf.mxu1 }
 0x52f   :  { %v2095_v60 = vpop.f32.mrf.mxu1 }
 0x530   :  { %2100 = vrot.lane.b32.xlu1 %v2095_v60, %s2403_s6 }
 0x531   :  { %v2225_v18 = vpop.f32.mrf.mxu1 }
 0x583   :  { %v1147_v33 = vpop.permute.xlu0 %1146 }
 0x584   :  { %v1149_v15 = vsel %vm258_vm2, %v687_v21, %v1147_v33 }
 0x585   :  { %1150 = vst.msk [vmem:[#allocation11] sm:$0xff] %vm617_vm10, %v1149_v15 }
 0x5a2   :  { %v2101_v30 = vpop.permute.xlu1 %2100 }
 0x5a3   :  { %v2103_v10 = vsel %vm258_vm2, %v1646_v9, %v2101_v30 }
 0x5a4   :  { %2105 = vst.msk [vmem:[#allocation11 + $0x8] sm:$0xff] %vm617_vm10, %v2103_v10 }
 0x5a5   :  { %2380 = shalt.err (!%p2377_p1)
}
 0x5a6   :  { %2117 = dma.vmem_to_hbm [thread:$0]  %s2112_s24, 256, %s3010_s5, [#allocation4], %s2402_s30, %s2402_s30, %s2403_s6  }
 0x5a7   :  { %2395 = dma.done.wait [#allocation4], 256  }
 0x5a8   :  { %2396 = vsyncadd [#allocation4], 4294967040 }
 0x5a9   :  { %2121 = vsyncpa [#allocation3], 1 }
 0x5aa   :  { %2122 = vsyncpa [#allocation6], 1 }
 0x5ab   :  { %2123 = vsyncpa [#allocation9], 1 }
 0x5ac   :  { %2124 = vsyncpa [#allocation4], 1 }

</bundles_post_ra>
